<compile_context>
chip_gen: v6e
topology: v6e:2x2x1
jax: 0.10.0
libtpu: 0.0.40
codegen_flags: <defaults>
</compile_context>

<pallas_src>
import functools

import jax
import jax.numpy as jnp
from jax.experimental import pallas as pl
from jax.experimental.pallas import tpu as pltpu


MXU_DTYPE = jnp.bfloat16   # MXU operand dtype (f32 accumulation everywhere)
ACT_DTYPE = jnp.bfloat16   # HBM storage dtype for activations that feed matmuls
_VMEM_LIMIT = 32 * 1024 * 1024  # raise v5e's 16 MiB scoped default; within v6e/v7x budgets


# ----------------------------------------------------------------------------
# Tiling helpers
# ----------------------------------------------------------------------------
def _pick_block_m(M, target=512):
    """Largest M-tile <= target that divides M.  target=512 for v6e roofline;
    cap at 256 on v7x (64 MiB VMEM) if re-deriving tiles for that chip."""
    if M <= target:
        return M
    for bm in (target, 256, 128, 64, 32, 16, 8):
        if M % bm == 0:
            return bm
    return M


def _pick_block_i(I, target=512):
    """Intermediate-dim chunk for the fused FFN kernel."""
    if I <= target:
        return I
    for b in (target, 384, 256, 128):
        if I % b == 0:
            return b
    return I


def _pick_seq_tile(S, target=128):
    if S <= target:
        return S
    for t in (target, 256, 128):
        if S % t == 0:
            return t
    return S


def _gelu(y):
    # TODO(synk): HF BERT uses exact erf-GELU; tanh approximation used here.
    return 0.5 * y * (1.0 + jnp.tanh(0.7978845608028654 * (y + 0.044715 * y * y * y)))


# ----------------------------------------------------------------------------
# Linear (fused QKV projection)
# ----------------------------------------------------------------------------
def _linear_kernel(x_ref, w_ref, b_ref, o_ref):
    y = jnp.dot(x_ref[...], w_ref[...], preferred_element_type=jnp.float32)
    o_ref[...] = (y + b_ref[...]).astype(o_ref.dtype)


def pallas_linear(x, w, b):
    M, K = x.shape
    N = w.shape[1]
    bm = _pick_block_m(M)
    return pl.pallas_call(
        _linear_kernel,
        out_shape=jax.ShapeDtypeStruct((M, N), ACT_DTYPE),
        grid=(M // bm,),
        in_specs=[
            pl.BlockSpec((bm, K), lambda i: (i, 0)),
            pl.BlockSpec((K, N), lambda i: (0, 0)),
            pl.BlockSpec((1, N), lambda i: (0, 0)),
        ],
        out_specs=pl.BlockSpec((bm, N), lambda i: (i, 0)),
        compiler_params=pltpu.CompilerParams(
            dimension_semantics=("parallel",),
            vmem_limit_bytes=_VMEM_LIMIT),
    )(x, w, b.reshape(1, N))


# ----------------------------------------------------------------------------
# Output projection + residual + LayerNorm (fused)
# ----------------------------------------------------------------------------
def _linear_res_ln_kernel(y_ref, w_ref, b_ref, res_ref, g_ref, bb_ref, o_ref, *, eps):
    y = jnp.dot(y_ref[...], w_ref[...], preferred_element_type=jnp.float32)
    x = res_ref[...].astype(jnp.float32) + y + b_ref[...]
    mu = jnp.mean(x, axis=-1, keepdims=True)
    var = jnp.mean((x - mu) * (x - mu), axis=-1, keepdims=True)
    o_ref[...] = ((x - mu) * jax.lax.rsqrt(var + eps) * g_ref[...]
                  + bb_ref[...]).astype(o_ref.dtype)


def pallas_linear_residual_ln(y, w, b, res, gamma, beta, eps=1e-12):
    M, K = y.shape
    N = w.shape[1]
    bm = _pick_block_m(M)
    kernel = functools.partial(_linear_res_ln_kernel, eps=eps)
    return pl.pallas_call(
        kernel,
        out_shape=jax.ShapeDtypeStruct((M, N), ACT_DTYPE),
        grid=(M // bm,),
        in_specs=[
            pl.BlockSpec((bm, K), lambda i: (i, 0)),
            pl.BlockSpec((K, N), lambda i: (0, 0)),
            pl.BlockSpec((1, N), lambda i: (0, 0)),
            pl.BlockSpec((bm, N), lambda i: (i, 0)),
            pl.BlockSpec((1, N), lambda i: (0, 0)),
            pl.BlockSpec((1, N), lambda i: (0, 0)),
        ],
        out_specs=pl.BlockSpec((bm, N), lambda i: (i, 0)),
        compiler_params=pltpu.CompilerParams(
            dimension_semantics=("parallel",),
            vmem_limit_bytes=_VMEM_LIMIT),
    )(y, w, b.reshape(1, N), res, gamma.reshape(1, N), beta.reshape(1, N))


# ----------------------------------------------------------------------------
# Fused FFN: GELU(x @ w1 + b1) @ w2 + b2, + residual + LayerNorm,
# gridded over (M tiles, intermediate chunks) with the intermediate kept in VMEM.
# ----------------------------------------------------------------------------
def _ffn_kernel(x_ref, w1_ref, b1_ref, w2_ref, b2_ref, res_ref, g_ref, bb_ref,
                o_ref, acc_ref, *, eps):
    j = pl.program_id(1)

    @pl.when(j == 0)
    def _():
        acc_ref[...] = jnp.zeros_like(acc_ref)

    h = jnp.dot(x_ref[...], w1_ref[...], preferred_element_type=jnp.float32) + b1_ref[...]
    h = _gelu(h)
    acc_ref[...] += jnp.dot(h.astype(MXU_DTYPE), w2_ref[...],
                            preferred_element_type=jnp.float32)

    @pl.when(j == pl.num_programs(1) - 1)
    def _():
        x = res_ref[...].astype(jnp.float32) + acc_ref[...] + b2_ref[...]
        mu = jnp.mean(x, axis=-1, keepdims=True)
        var = jnp.mean((x - mu) * (x - mu), axis=-1, keepdims=True)
        o_ref[...] = ((x - mu) * jax.lax.rsqrt(var + eps) * g_ref[...]
                      + bb_ref[...]).astype(o_ref.dtype)


def pallas_ffn(x, w1, b1, w2, b2, res, gamma, beta, eps=1e-12):
    M, H = x.shape
    I = w1.shape[1]
    bm = _pick_block_m(M)
    bi = _pick_block_i(I)
    kernel = functools.partial(_ffn_kernel, eps=eps)
    return pl.pallas_call(
        kernel,
        out_shape=jax.ShapeDtypeStruct((M, H), ACT_DTYPE),
        grid=(M // bm, I // bi),
        in_specs=[
            pl.BlockSpec((bm, H), lambda i, j: (i, 0)),
            pl.BlockSpec((H, bi), lambda i, j: (0, j)),
            pl.BlockSpec((1, bi), lambda i, j: (0, j)),
            pl.BlockSpec((bi, H), lambda i, j: (j, 0)),
            pl.BlockSpec((1, H), lambda i, j: (0, 0)),
            pl.BlockSpec((bm, H), lambda i, j: (i, 0)),
            pl.BlockSpec((1, H), lambda i, j: (0, 0)),
            pl.BlockSpec((1, H), lambda i, j: (0, 0)),
        ],
        out_specs=pl.BlockSpec((bm, H), lambda i, j: (i, 0)),
        scratch_shapes=[pltpu.VMEM((bm, H), jnp.float32)],
        compiler_params=pltpu.CompilerParams(
            dimension_semantics=("parallel", "arbitrary"),
            vmem_limit_bytes=_VMEM_LIMIT),
    )(x, w1, b1.reshape(1, I), w2, b2.reshape(1, H), res,
      gamma.reshape(1, H), beta.reshape(1, H))


# ----------------------------------------------------------------------------
# LayerNorm (embeddings)
# ----------------------------------------------------------------------------
def _layernorm_kernel(x_ref, g_ref, b_ref, o_ref, *, eps):
    x = x_ref[...]
    mu = jnp.mean(x, axis=-1, keepdims=True)
    var = jnp.mean((x - mu) * (x - mu), axis=-1, keepdims=True)
    o_ref[...] = ((x - mu) * jax.lax.rsqrt(var + eps) * g_ref[...]
                  + b_ref[...]).astype(o_ref.dtype)


def pallas_layernorm(x, gamma, beta, eps=1e-12):
    M, H = x.shape
    bm = _pick_block_m(M)
    kernel = functools.partial(_layernorm_kernel, eps=eps)
    return pl.pallas_call(
        kernel,
        out_shape=jax.ShapeDtypeStruct((M, H), ACT_DTYPE),
        grid=(M // bm,),
        in_specs=[
            pl.BlockSpec((bm, H), lambda i: (i, 0)),
            pl.BlockSpec((1, H), lambda i: (0, 0)),
            pl.BlockSpec((1, H), lambda i: (0, 0)),
        ],
        out_specs=pl.BlockSpec((bm, H), lambda i: (i, 0)),
        compiler_params=pltpu.CompilerParams(
            dimension_semantics=("parallel",),
            vmem_limit_bytes=_VMEM_LIMIT),
    )(x, gamma.reshape(1, H), beta.reshape(1, H))


# ----------------------------------------------------------------------------
# Flash-style attention: grid (batch, head, q-tile, kv-tile) with online softmax.
# Per-head Q/K/V blocks are lane-dense (Dh is the full last array dim) and DMA'd
# by the BlockSpec; the output block for a (b, h, q-tile) is written exactly once.
# ----------------------------------------------------------------------------
def _flash_attn_kernel(q_ref, k_ref, v_ref, m_ref, o_ref,
                       m_sc, l_sc, acc_sc, *, scale):
    kv = pl.program_id(3)

    @pl.when(kv == 0)
    def _():
        m_sc[...] = jnp.full_like(m_sc, -jnp.inf)
        l_sc[...] = jnp.zeros_like(l_sc)
        acc_sc[...] = jnp.zeros_like(acc_sc)

    q = q_ref[...]          # (tq, Dh) bf16
    k = k_ref[...]          # (tk, Dh) bf16
    v = v_ref[...]          # (tk, Dh) bf16

    # scores: contract over Dh without an explicit transpose
    s = jax.lax.dot_general(q, k, (((1,), (1,)), ((), ())),
                            preferred_element_type=jnp.float32) * scale
    s = s + m_ref[...]      # additive mask (1, tk) broadcasts over query rows

    m_prev = m_sc[...]
    m_new = jnp.maximum(m_prev, jnp.max(s, axis=-1, keepdims=True))
    alpha = jnp.exp(m_prev - m_new)
    p = jnp.exp(s - m_new)
    l_sc[...] = alpha * l_sc[...] + jnp.sum(p, axis=-1, keepdims=True)
    acc_sc[...] = alpha * acc_sc[...] + jnp.dot(
        p.astype(MXU_DTYPE), v, preferred_element_type=jnp.float32)
    m_sc[...] = m_new

    @pl.when(kv == pl.num_programs(3) - 1)
    def _():
        inv_l = pl.reciprocal(l_sc[...], approx=True)
        o_ref[...] = (acc_sc[...] * inv_l).astype(o_ref.dtype)


def pallas_attention(q, k, v, add_mask, scale):
    # q, k, v: (B, nH, S, Dh)   add_mask: (B, 1, S)
    B, nH, S, Dh = q.shape
    tq = _pick_seq_tile(S)
    tk = _pick_seq_tile(S)
    kernel = functools.partial(_flash_attn_kernel, scale=scale)
    return pl.pallas_call(
        kernel,
        out_shape=jax.ShapeDtypeStruct((B, nH, S, Dh), ACT_DTYPE),
        grid=(B, nH, S // tq, S // tk),
        in_specs=[
            pl.BlockSpec((None, None, tq, Dh), lambda b, h, qi, ki: (b, h, qi, 0)),
            pl.BlockSpec((None, None, tk, Dh), lambda b, h, qi, ki: (b, h, ki, 0)),
            pl.BlockSpec((None, None, tk, Dh), lambda b, h, qi, ki: (b, h, ki, 0)),
            pl.BlockSpec((None, 1, tk), lambda b, h, qi, ki: (b, 0, ki)),
        ],
        out_specs=pl.BlockSpec((None, None, tq, Dh), lambda b, h, qi, ki: (b, h, qi, 0)),
        scratch_shapes=[
            pltpu.VMEM((tq, 1), jnp.float32),
            pltpu.VMEM((tq, 1), jnp.float32),
            pltpu.VMEM((tq, Dh), jnp.float32),
        ],
        compiler_params=pltpu.CompilerParams(
            dimension_semantics=("parallel", "parallel", "parallel", "arbitrary"),
            vmem_limit_bytes=_VMEM_LIMIT),
    )(q, k, v, add_mask)


# ----------------------------------------------------------------------------
# Pooler (tanh) + classifier fused; classifier padded to a lane-dense 128 output.
# ----------------------------------------------------------------------------
def _pool_cls_kernel(x_ref, pw_ref, pb_ref, cw_ref, cb_ref, o_ref):
    pooled = jnp.tanh(
        jnp.dot(x_ref[...], pw_ref[...], preferred_element_type=jnp.float32)
        + pb_ref[...])
    o_ref[...] = (jnp.dot(pooled.astype(MXU_DTYPE), cw_ref[...],
                          preferred_element_type=jnp.float32) + cb_ref[...])


def pallas_pool_classify(cls_tok, pool_w, pool_b, cls_w, cls_b):
    B, H = cls_tok.shape
    L = cls_w.shape[1]
    Lp = max(L, 128)  # pad logits to a full 128-lane store; slice outside
    cw = jnp.pad(cls_w, ((0, 0), (0, Lp - L)))
    cb = jnp.pad(cls_b, (0, Lp - L))
    out = pl.pallas_call(
        _pool_cls_kernel,
        out_shape=jax.ShapeDtypeStruct((B, Lp), jnp.float32),
        in_specs=[
            pl.BlockSpec((B, H), lambda: (0, 0)),
            pl.BlockSpec((H, H), lambda: (0, 0)),
            pl.BlockSpec((1, H), lambda: (0, 0)),
            pl.BlockSpec((H, Lp), lambda: (0, 0)),
            pl.BlockSpec((1, Lp), lambda: (0, 0)),
        ],
        out_specs=pl.BlockSpec((B, Lp), lambda: (0, 0)),
        compiler_params=pltpu.CompilerParams(vmem_limit_bytes=_VMEM_LIMIT),
    )(cls_tok, pool_w, pool_b.reshape(1, H), cw, cb.reshape(1, Lp))
    return out[:, :L]


# ----------------------------------------------------------------------------
# Synthetic "mini-BERT" config + deterministic params (bf16 matmul weights)
# ----------------------------------------------------------------------------
CFG = dict(
    vocab_size=100,
    type_vocab_size=2,
    max_position=16,
    hidden=32,
    heads=2,
    layers=2,
    intermediate=64,
    num_labels=2,
)


def _normal(key, shape, scale=0.02, dtype=jnp.float32):
    return (scale * jax.random.normal(key, shape, dtype=jnp.float32)).astype(dtype)


def init_params(seed=0):
    cfg = CFG
    H, I = cfg["hidden"], cfg["intermediate"]
    keys = jax.random.split(jax.random.PRNGKey(seed), 64)
    ki = iter(range(64))
    nk = lambda: keys[next(ki)]

    params = {
        "word_emb": _normal(nk(), (cfg["vocab_size"], H)),
        "pos_emb": _normal(nk(), (cfg["max_position"], H)),
        "type_emb": _normal(nk(), (cfg["type_vocab_size"], H)),
        "emb_ln_g": jnp.ones((H,), jnp.float32),
        "emb_ln_b": jnp.zeros((H,), jnp.float32),
        "layers": [],
        "pool_w": _normal(nk(), (H, H), dtype=MXU_DTYPE),
        "pool_b": jnp.zeros((H,), jnp.float32),
        "cls_w": _normal(nk(), (H, cfg["num_labels"]), dtype=MXU_DTYPE),
        "cls_b": jnp.zeros((cfg["num_labels"],), jnp.float32),
    }
    for _ in range(cfg["layers"]):
        wq = _normal(nk(), (H, H))
        wk = _normal(nk(), (H, H))
        wv = _normal(nk(), (H, H))
        params["layers"].append(
            dict(
                # fused QKV projection: (H, 3H) bf16 weight, (3H,) f32 bias
                wqkv=jnp.concatenate([wq, wk, wv], axis=1).astype(MXU_DTYPE),
                bqkv=jnp.zeros((3 * H,), jnp.float32),
                wo=_normal(nk(), (H, H), dtype=MXU_DTYPE), bo=jnp.zeros((H,), jnp.float32),
                ln1_g=jnp.ones((H,), jnp.float32), ln1_b=jnp.zeros((H,), jnp.float32),
                w1=_normal(nk(), (H, I), dtype=MXU_DTYPE), b1=jnp.zeros((I,), jnp.float32),
                w2=_normal(nk(), (I, H), dtype=MXU_DTYPE), b2=jnp.zeros((H,), jnp.float32),
                ln2_g=jnp.ones((H,), jnp.float32), ln2_b=jnp.zeros((H,), jnp.float32),
            )
        )
    return params


# ----------------------------------------------------------------------------
# RewardModel forward
# ----------------------------------------------------------------------------
def reward_model_forward(params, input_ids, attention_mask, token_type_ids):
    cfg = CFG
    B, S = input_ids.shape
    H, nH = cfg["hidden"], cfg["heads"]
    Dh = H // nH
    M = B * S

    # ---- embeddings (gather is glue) + layernorm (Pallas) ----
    pos_ids = jnp.arange(S, dtype=jnp.int32)
    emb = (
        jnp.take(params["word_emb"], input_ids, axis=0)
        + jnp.take(params["pos_emb"], pos_ids, axis=0)[None, :, :]
        + jnp.take(params["type_emb"], token_type_ids, axis=0)
    )  # (B, S, H) f32
    x = pallas_layernorm(emb.reshape(M, H), params["emb_ln_g"], params["emb_ln_b"])  # bf16

    # additive attention mask, BERT-style: (1 - mask) * -10000, shape (B, 1, S)
    add_mask = ((1.0 - attention_mask.astype(jnp.float32)) * -10000.0).reshape(B, 1, S)
    scale = 1.0 / float(Dh) ** 0.5

    for lyr in params["layers"]:
        # fused QKV projection: one kernel, (M, 3H) bf16 output
        qkv = pallas_linear(x, lyr["wqkv"], lyr["bqkv"])
        # head split on the wrapper side (layout glue) -> (3, B, nH, S, Dh)
        qkv_h = qkv.reshape(B, S, 3, nH, Dh).transpose(2, 0, 3, 1, 4)
        q, k, v = qkv_h[0], qkv_h[1], qkv_h[2]
        # flash attention over (batch, head, q-tile, kv-tile) grid
        ctx = pallas_attention(q, k, v, add_mask, scale)          # (B, nH, S, Dh) bf16
        ctx = ctx.transpose(0, 2, 1, 3).reshape(M, H)             # merge heads (glue)
        # output projection + residual + LN fused
        x = pallas_linear_residual_ln(
            ctx, lyr["wo"], lyr["bo"], x, lyr["ln1_g"], lyr["ln1_b"]
        )
        # fully fused FFN (up-proj + GELU + down-proj + residual + LN, one launch)
        x = pallas_ffn(
            x, lyr["w1"], lyr["b1"], lyr["w2"], lyr["b2"], x, lyr["ln2_g"], lyr["ln2_b"]
        )

    # ---- pooler tanh + 2-way classifier fused ----
    cls_tok = x.reshape(B, S, H)[:, 0, :]  # (B, H)
    logits = pallas_pool_classify(
        cls_tok, params["pool_w"], params["pool_b"], params["cls_w"], params["cls_b"]
    )
    return logits


# ----------------------------------------------------------------------------
if __name__ == "__main__":
    B, S = 2, 8
    key = jax.random.PRNGKey(0)
    k1, k2, k3 = jax.random.split(key, 3)

    input_ids = jax.random.randint(k1, (B, S), 0, CFG["vocab_size"], dtype=jnp.int32)
    attention_mask = jnp.ones((B, S), dtype=jnp.int32).at[1, 6:].set(0)
    token_type_ids = jax.random.randint(k3, (B, S), 0, CFG["type_vocab_size"], dtype=jnp.int32)

    params = init_params(seed=0)

    fwd = jax.jit(reward_model_forward)
    logits = fwd(params, input_ids, attention_mask, token_type_ids)
    logits = jax.block_until_ready(logits)

    assert logits.shape == (B, CFG["num_labels"])
    assert logits.dtype == jnp.float32
    assert bool(jnp.all(jnp.isfinite(logits)))
    print("KERNEL_OK")
</pallas_src>

<mosaic_0001>
module attributes {stable_mosaic.version = 11 : i64} {
  func.func @_linear_kernel(%arg0: i32, %arg1: memref<16x32xbf16, #tpu.memory_space<vmem>>, %arg2: memref<32x96xbf16, #tpu.memory_space<vmem>>, %arg3: memref<1x96xf32, #tpu.memory_space<vmem>>, %arg4: memref<16x96xbf16, #tpu.memory_space<vmem>>) attributes {dimension_semantics = [#tpu.dimension_semantics<parallel>], iteration_bounds = array<i64: 1>, scalar_prefetch = 0 : i64, scratch_operands = 0 : i64, tpu.core_type = #tpu.core_type<tc>, window_params = [{transform_indices = @transform_0, window_bounds = array<i64: 16, 32>}, {pipeline_mode = #tpu.pipeline_mode<synchronous>, transform_indices = @transform_1, window_bounds = array<i64: 32, 96>}, {pipeline_mode = #tpu.pipeline_mode<synchronous>, transform_indices = @transform_2, window_bounds = array<i64: 1, 96>}, {transform_indices = @transform_3, window_bounds = array<i64: 16, 96>}]} {
    %c0 = arith.constant 0 : index
    %c0_0 = arith.constant 0 : index
    %0 = vector.load %arg1[%c0, %c0_0] : memref<16x32xbf16, #tpu.memory_space<vmem>>, vector<16x32xbf16>
    %c0_1 = arith.constant 0 : index
    %c0_2 = arith.constant 0 : index
    %1 = vector.load %arg2[%c0_1, %c0_2] : memref<32x96xbf16, #tpu.memory_space<vmem>>, vector<32x96xbf16>
    %cst = arith.constant dense<0.000000e+00> : vector<16x96xf32>
    %2 = tpu.matmul %0, %1, %cst {dimension_numbers = #tpu.dot_dimension_numbers<[1], [0], [0], [1], [0, 0, 1, 1], [], []>} : vector<16x32xbf16>, vector<32x96xbf16>, vector<16x96xf32> -> vector<16x96xf32>
    %c0_3 = arith.constant 0 : index
    %c0_4 = arith.constant 0 : index
    %3 = vector.load %arg3[%c0_3, %c0_4] : memref<1x96xf32, #tpu.memory_space<vmem>>, vector<1x96xf32>
    %4 = vector.broadcast %3 : vector<1x96xf32> to vector<16x96xf32>
    %5 = arith.addf %2, %4 : vector<16x96xf32>
    %6 = arith.truncf %5 : vector<16x96xf32> to vector<16x96xbf16>
    %c0_5 = arith.constant 0 : index
    %c0_6 = arith.constant 0 : index
    %7 = vector.load %arg4[%c0_5, %c0_6] : memref<16x96xbf16, #tpu.memory_space<vmem>>, vector<16x96xbf16>
    tpu.vector_store %arg4[%c0_5, %c0_6], %6 {strides = array<i32>} : memref<16x96xbf16, #tpu.memory_space<vmem>>, vector<16x96xbf16>,
    return
  }
  func.func @transform_0(%arg0: i32) -> (i32, i32) {
    %c0_i32 = arith.constant 0 : i32
    %c0_i32_0 = arith.constant 0 : i32
    return %arg0, %c0_i32 : i32, i32
  }
  func.func @transform_1(%arg0: i32) -> (i32, i32) {
    %c0_i32 = arith.constant 0 : i32
    %c0_i32_0 = arith.constant 0 : i32
    %c0_i32_1 = arith.constant 0 : i32
    return %c0_i32, %c0_i32_0 : i32, i32
  }
  func.func @transform_2(%arg0: i32) -> (i32, i32) {
    %c0_i32 = arith.constant 0 : i32
    %c0_i32_0 = arith.constant 0 : i32
    %c0_i32_1 = arith.constant 0 : i32
    return %c0_i32, %c0_i32_0 : i32, i32
  }
  func.func @transform_3(%arg0: i32) -> (i32, i32) {
    %c0_i32 = arith.constant 0 : i32
    %c0_i32_0 = arith.constant 0 : i32
    return %arg0, %c0_i32 : i32, i32
  }
}

module attributes {stable_mosaic.version = 11 : i64} {
  func.func @_layernorm_kernel(%arg0: i32, %arg1: memref<16x32xf32, #tpu.memory_space<vmem>>, %arg2: memref<1x32xf32, #tpu.memory_space<vmem>>, %arg3: memref<1x32xf32, #tpu.memory_space<vmem>>, %arg4: memref<16x32xbf16, #tpu.memory_space<vmem>>) attributes {dimension_semantics = [#tpu.dimension_semantics<parallel>], iteration_bounds = array<i64: 1>, scalar_prefetch = 0 : i64, scratch_operands = 0 : i64, tpu.core_type = #tpu.core_type<tc>, window_params = [{transform_indices = @transform_0, window_bounds = array<i64: 16, 32>}, {pipeline_mode = #tpu.pipeline_mode<synchronous>, transform_indices = @transform_1, window_bounds = array<i64: 1, 32>}, {pipeline_mode = #tpu.pipeline_mode<synchronous>, transform_indices = @transform_2, window_bounds = array<i64: 1, 32>}, {transform_indices = @transform_3, window_bounds = array<i64: 16, 32>}]} {
    %c0 = arith.constant 0 : index
    %c0_0 = arith.constant 0 : index
    %0 = vector.load %arg1[%c0, %c0_0] : memref<16x32xf32, #tpu.memory_space<vmem>>, vector<16x32xf32>
    %cst = arith.constant dense<0.000000e+00> : vector<16xf32>
    %1 = vector.multi_reduction <add>, %0, %cst [1] : vector<16x32xf32> to vector<16xf32>
    %2 = vector.shape_cast %1 : vector<16xf32> to vector<16x1xf32>
    %cst_1 = arith.constant 3.200000e+01 : f32
    %3 = vector.broadcast %cst_1 : f32 to vector<16x1xf32>
    %4 = arith.divf %2, %3 : vector<16x1xf32>
    %5 = vector.broadcast %4 : vector<16x1xf32> to vector<16x32xf32>
    %6 = arith.subf %0, %5 : vector<16x32xf32>
    %7 = vector.broadcast %4 : vector<16x1xf32> to vector<16x32xf32>
    %8 = arith.subf %0, %7 : vector<16x32xf32>
    %9 = arith.mulf %6, %8 : vector<16x32xf32>
    %cst_2 = arith.constant dense<0.000000e+00> : vector<16xf32>
    %10 = vector.multi_reduction <add>, %9, %cst_2 [1] : vector<16x32xf32> to vector<16xf32>
    %11 = vector.shape_cast %10 : vector<16xf32> to vector<16x1xf32>
    %cst_3 = arith.constant 3.200000e+01 : f32
    %12 = vector.broadcast %cst_3 : f32 to vector<16x1xf32>
    %13 = arith.divf %11, %12 : vector<16x1xf32>
    %14 = vector.broadcast %4 : vector<16x1xf32> to vector<16x32xf32>
    %15 = arith.subf %0, %14 : vector<16x32xf32>
    %cst_4 = arith.constant 9.99999996E-13 : f32
    %16 = vector.broadcast %cst_4 : f32 to vector<16x1xf32>
    %17 = arith.addf %13, %16 : vector<16x1xf32>
    %18 = math.rsqrt %17 : vector<16x1xf32>
    %19 = vector.broadcast %18 : vector<16x1xf32> to vector<16x32xf32>
    %20 = arith.mulf %15, %19 : vector<16x32xf32>
    %c0_5 = arith.constant 0 : index
    %c0_6 = arith.constant 0 : index
    %21 = vector.load %arg2[%c0_5, %c0_6] : memref<1x32xf32, #tpu.memory_space<vmem>>, vector<1x32xf32>
    %22 = vector.broadcast %21 : vector<1x32xf32> to vector<16x32xf32>
    %23 = arith.mulf %20, %22 : vector<16x32xf32>
    %c0_7 = arith.constant 0 : index
    %c0_8 = arith.constant 0 : index
    %24 = vector.load %arg3[%c0_7, %c0_8] : memref<1x32xf32, #tpu.memory_space<vmem>>, vector<1x32xf32>
    %25 = vector.broadcast %24 : vector<1x32xf32> to vector<16x32xf32>
    %26 = arith.addf %23, %25 : vector<16x32xf32>
    %27 = arith.truncf %26 : vector<16x32xf32> to vector<16x32xbf16>
    %c0_9 = arith.constant 0 : index
    %c0_10 = arith.constant 0 : index
    %28 = vector.load %arg4[%c0_9, %c0_10] : memref<16x32xbf16, #tpu.memory_space<vmem>>, vector<16x32xbf16>
    tpu.vector_store %arg4[%c0_9, %c0_10], %27 {strides = array<i32>} : memref<16x32xbf16, #tpu.memory_space<vmem>>, vector<16x32xbf16>,
    return
  }
  func.func @transform_0(%arg0: i32) -> (i32, i32) {
    %c0_i32 = arith.constant 0 : i32
    %c0_i32_0 = arith.constant 0 : i32
    return %arg0, %c0_i32 : i32, i32
  }
  func.func @transform_1(%arg0: i32) -> (i32, i32) {
    %c0_i32 = arith.constant 0 : i32
    %c0_i32_0 = arith.constant 0 : i32
    %c0_i32_1 = arith.constant 0 : i32
    return %c0_i32, %c0_i32_0 : i32, i32
  }
  func.func @transform_2(%arg0: i32) -> (i32, i32) {
    %c0_i32 = arith.constant 0 : i32
    %c0_i32_0 = arith.constant 0 : i32
    %c0_i32_1 = arith.constant 0 : i32
    return %c0_i32, %c0_i32_0 : i32, i32
  }
  func.func @transform_3(%arg0: i32) -> (i32, i32) {
    %c0_i32 = arith.constant 0 : i32
    %c0_i32_0 = arith.constant 0 : i32
    return %arg0, %c0_i32 : i32, i32
  }
}

module attributes {stable_mosaic.version = 11 : i64} {
  func.func @_flash_attn_kernel(%arg0: i32, %arg1: i32, %arg2: i32, %arg3: i32, %arg4: memref<1x1x8x16xbf16, #tpu.memory_space<vmem>>, %arg5: memref<1x1x8x16xbf16, #tpu.memory_space<vmem>>, %arg6: memref<1x1x8x16xbf16, #tpu.memory_space<vmem>>, %arg7: memref<1x1x8xf32, #tpu.memory_space<vmem>>, %arg8: memref<1x1x8x16xbf16, #tpu.memory_space<vmem>>, %arg9: memref<8x1xf32, #tpu.memory_space<vmem>>, %arg10: memref<8x1xf32, #tpu.memory_space<vmem>>, %arg11: memref<8x16xf32, #tpu.memory_space<vmem>>) attributes {dimension_semantics = [#tpu.dimension_semantics<parallel>, #tpu.dimension_semantics<parallel>, #tpu.dimension_semantics<parallel>, #tpu.dimension_semantics<arbitrary>], iteration_bounds = array<i64: 2, 2, 1, 1>, scalar_prefetch = 0 : i64, scratch_operands = 3 : i64, tpu.core_type = #tpu.core_type<tc>, window_params = [{transform_indices = @transform_0, window_bounds = array<i64: 1, 1, 8, 16>}, {transform_indices = @transform_1, window_bounds = array<i64: 1, 1, 8, 16>}, {transform_indices = @transform_2, window_bounds = array<i64: 1, 1, 8, 16>}, {transform_indices = @transform_3, window_bounds = array<i64: 1, 1, 8>}, {transform_indices = @transform_4, window_bounds = array<i64: 1, 1, 8, 16>}]} {
    %c0_i32 = arith.constant 0 : i32
    %0 = arith.cmpi eq, %arg3, %c0_i32 : i32
    %1 = arith.extui %0 : i1 to i32
    %c0_i32_0 = arith.constant 0 : i32
    %2 = arith.cmpi ne, %1, %c0_i32_0 : i32
    scf.if %2 {
      %cst_33 = arith.constant 0xFF800000 : f32
      %42 = vector.broadcast %cst_33 : f32 to vector<8x1xf32>
      %c0_34 = arith.constant 0 : index
      %c0_35 = arith.constant 0 : index
      %43 = vector.load %arg9[%c0_34, %c0_35] : memref<8x1xf32, #tpu.memory_space<vmem>>, vector<8x1xf32>
      tpu.vector_store %arg9[%c0_34, %c0_35], %42 {strides = array<i32>} : memref<8x1xf32, #tpu.memory_space<vmem>>, vector<8x1xf32>,
      %cst_36 = arith.constant 0.000000e+00 : f32
      %44 = vector.broadcast %cst_36 : f32 to vector<8x1xf32>
      %c0_37 = arith.constant 0 : index
      %c0_38 = arith.constant 0 : index
      %45 = vector.load %arg10[%c0_37, %c0_38] : memref<8x1xf32, #tpu.memory_space<vmem>>, vector<8x1xf32>
      tpu.vector_store %arg10[%c0_37, %c0_38], %44 {strides = array<i32>} : memref<8x1xf32, #tpu.memory_space<vmem>>, vector<8x1xf32>,
      %cst_39 = arith.constant 0.000000e+00 : f32
      %46 = vector.broadcast %cst_39 : f32 to vector<8x16xf32>
      %c0_40 = arith.constant 0 : index
      %c0_41 = arith.constant 0 : index
      %47 = vector.load %arg11[%c0_40, %c0_41] : memref<8x16xf32, #tpu.memory_space<vmem>>, vector<8x16xf32>
      tpu.vector_store %arg11[%c0_40, %c0_41], %46 {strides = array<i32>} : memref<8x16xf32, #tpu.memory_space<vmem>>, vector<8x16xf32>,
    } else {
    }
    %c0 = arith.constant 0 : index
    %c0_1 = arith.constant 0 : index
    %c0_2 = arith.constant 0 : index
    %c0_3 = arith.constant 0 : index
    %3 = vector.load %arg4[%c0, %c0_1, %c0_2, %c0_3] : memref<1x1x8x16xbf16, #tpu.memory_space<vmem>>, vector<1x1x8x16xbf16>
    %4 = vector.shape_cast %3 : vector<1x1x8x16xbf16> to vector<8x16xbf16>
    %c0_4 = arith.constant 0 : index
    %c0_5 = arith.constant 0 : index
    %c0_6 = arith.constant 0 : index
    %c0_7 = arith.constant 0 : index
    %5 = vector.load %arg5[%c0_4, %c0_5, %c0_6, %c0_7] : memref<1x1x8x16xbf16, #tpu.memory_space<vmem>>, vector<1x1x8x16xbf16>
    %6 = vector.shape_cast %5 : vector<1x1x8x16xbf16> to vector<8x16xbf16>
    %c0_8 = arith.constant 0 : index
    %c0_9 = arith.constant 0 : index
    %c0_10 = arith.constant 0 : index
    %c0_11 = arith.constant 0 : index
    %7 = vector.load %arg6[%c0_8, %c0_9, %c0_10, %c0_11] : memref<1x1x8x16xbf16, #tpu.memory_space<vmem>>, vector<1x1x8x16xbf16>
    %8 = vector.shape_cast %7 : vector<1x1x8x16xbf16> to vector<8x16xbf16>
    %cst = arith.constant dense<0.000000e+00> : vector<8x8xf32>
    %9 = tpu.matmul %4, %6, %cst {dimension_numbers = #tpu.dot_dimension_numbers<[1], [1], [0], [0], [0, 0, 1, 0], [], []>} : vector<8x16xbf16>, vector<8x16xbf16>, vector<8x8xf32> -> vector<8x8xf32>
    %cst_12 = arith.constant 2.500000e-01 : f32
    %10 = vector.broadcast %cst_12 : f32 to vector<8x8xf32>
    %11 = arith.mulf %9, %10 : vector<8x8xf32>
    %c0_13 = arith.constant 0 : index
    %c0_14 = arith.constant 0 : index
    %c0_15 = arith.constant 0 : index
    %12 = vector.load %arg7[%c0_13, %c0_14, %c0_15] : memref<1x1x8xf32, #tpu.memory_space<vmem>>, vector<1x1x8xf32>
    %13 = vector.shape_cast %12 : vector<1x1x8xf32> to vector<1x8xf32>
    %14 = vector.broadcast %13 : vector<1x8xf32> to vector<8x8xf32>
    %15 = arith.addf %11, %14 : vector<8x8xf32>
    %c0_16 = arith.constant 0 : index
    %c0_17 = arith.constant 0 : index
    %16 = vector.load %arg9[%c0_16, %c0_17] : memref<8x1xf32, #tpu.memory_space<vmem>>, vector<8x1xf32>
    %cst_18 = arith.constant dense<0xFF800000> : vector<8xf32>
    %17 = vector.multi_reduction <maximumf>, %15, %cst_18 [1] : vector<8x8xf32> to vector<8xf32>
    %18 = vector.shape_cast %17 : vector<8xf32> to vector<8x1xf32>
    %19 = arith.maximumf %16, %18 : vector<8x1xf32>
    %20 = arith.subf %16, %19 : vector<8x1xf32>
    %21 = math.exp %20 : vector<8x1xf32>
    %22 = vector.broadcast %19 : vector<8x1xf32> to vector<8x8xf32>
    %23 = arith.subf %15, %22 : vector<8x8xf32>
    %24 = math.exp %23 : vector<8x8xf32>
    %c0_19 = arith.constant 0 : index
    %c0_20 = arith.constant 0 : index
    %25 = vector.load %arg10[%c0_19, %c0_20] : memref<8x1xf32, #tpu.memory_space<vmem>>, vector<8x1xf32>
    %26 = arith.mulf %21, %25 : vector<8x1xf32>
    %cst_21 = arith.constant dense<0.000000e+00> : vector<8xf32>
    %27 = vector.multi_reduction <add>, %24, %cst_21 [1] : vector<8x8xf32> to vector<8xf32>
    %28 = vector.shape_cast %27 : vector<8xf32> to vector<8x1xf32>
    %29 = arith.addf %26, %28 : vector<8x1xf32>
    %c0_22 = arith.constant 0 : index
    %c0_23 = arith.constant 0 : index
    %30 = vector.load %arg10[%c0_22, %c0_23] : memref<8x1xf32, #tpu.memory_space<vmem>>, vector<8x1xf32>
    tpu.vector_store %arg10[%c0_22, %c0_23], %29 {strides = array<i32>} : memref<8x1xf32, #tpu.memory_space<vmem>>, vector<8x1xf32>,
    %c0_24 = arith.constant 0 : index
    %c0_25 = arith.constant 0 : index
    %31 = vector.load %arg11[%c0_24, %c0_25] : memref<8x16xf32, #tpu.memory_space<vmem>>, vector<8x16xf32>
    %32 = vector.broadcast %21 : vector<8x1xf32> to vector<8x16xf32>
    %33 = arith.mulf %32, %31 : vector<8x16xf32>
    %34 = arith.truncf %24 : vector<8x8xf32> to vector<8x8xbf16>
    %cst_26 = arith.constant dense<0.000000e+00> : vector<8x16xf32>
    %35 = tpu.matmul %34, %8, %cst_26 {dimension_numbers = #tpu.dot_dimension_numbers<[1], [0], [0], [1], [0, 0, 1, 1], [], []>} : vector<8x8xbf16>, vector<8x16xbf16>, vector<8x16xf32> -> vector<8x16xf32>
    %36 = arith.addf %33, %35 : vector<8x16xf32>
    %c0_27 = arith.constant 0 : index
    %c0_28 = arith.constant 0 : index
    %37 = vector.load %arg11[%c0_27, %c0_28] : memref<8x16xf32, #tpu.memory_space<vmem>>, vector<8x16xf32>
    tpu.vector_store %arg11[%c0_27, %c0_28], %36 {strides = array<i32>} : memref<8x16xf32, #tpu.memory_space<vmem>>, vector<8x16xf32>,
    %c0_29 = arith.constant 0 : index
    %c0_30 = arith.constant 0 : index
    %38 = vector.load %arg9[%c0_29, %c0_30] : memref<8x1xf32, #tpu.memory_space<vmem>>, vector<8x1xf32>
    tpu.vector_store %arg9[%c0_29, %c0_30], %19 {strides = array<i32>} : memref<8x1xf32, #tpu.memory_space<vmem>>, vector<8x1xf32>,
    %c0_i32_31 = arith.constant 0 : i32
    %39 = arith.cmpi eq, %arg3, %c0_i32_31 : i32
    %40 = arith.extui %39 : i1 to i32
    %c0_i32_32 = arith.constant 0 : i32
    %41 = arith.cmpi ne, %40, %c0_i32_32 : i32
    scf.if %41 {
      %c0_33 = arith.constant 0 : index
      %c0_34 = arith.constant 0 : index
      %42 = vector.load %arg10[%c0_33, %c0_34] : memref<8x1xf32, #tpu.memory_space<vmem>>, vector<8x1xf32>
      %43 = tpu.reciprocal %42 {approx = true} : vector<8x1xf32> -> vector<8x1xf32>
      %c0_35 = arith.constant 0 : index
      %c0_36 = arith.constant 0 : index
      %44 = vector.load %arg11[%c0_35, %c0_36] : memref<8x16xf32, #tpu.memory_space<vmem>>, vector<8x16xf32>
      %45 = vector.broadcast %43 : vector<8x1xf32> to vector<8x16xf32>
      %46 = arith.mulf %44, %45 : vector<8x16xf32>
      %47 = arith.truncf %46 : vector<8x16xf32> to vector<8x16xbf16>
      %c0_37 = arith.constant 0 : index
      %c0_38 = arith.constant 0 : index
      %c0_39 = arith.constant 0 : index
      %c0_40 = arith.constant 0 : index
      %48 = vector.load %arg8[%c0_37, %c0_38, %c0_39, %c0_40] : memref<1x1x8x16xbf16, #tpu.memory_space<vmem>>, vector<1x1x8x16xbf16>
      %49 = vector.shape_cast %48 : vector<1x1x8x16xbf16> to vector<8x16xbf16>
      %50 = vector.shape_cast %47 : vector<8x16xbf16> to vector<1x1x8x16xbf16>
      tpu.vector_store %arg8[%c0_37, %c0_38, %c0_39, %c0_40], %50 {strides = array<i32>} : memref<1x1x8x16xbf16, #tpu.memory_space<vmem>>, vector<1x1x8x16xbf16>,
    } else {
    }
    return
  }
  func.func @transform_0(%arg0: i32, %arg1: i32, %arg2: i32, %arg3: i32) -> (i32, i32, i32, i32) {
    %c0_i32 = arith.constant 0 : i32
    %c0_i32_0 = arith.constant 0 : i32
    return %arg0, %arg1, %arg2, %c0_i32 : i32, i32, i32, i32
  }
  func.func @transform_1(%arg0: i32, %arg1: i32, %arg2: i32, %arg3: i32) -> (i32, i32, i32, i32) {
    %c0_i32 = arith.constant 0 : i32
    %c0_i32_0 = arith.constant 0 : i32
    return %arg0, %arg1, %arg3, %c0_i32 : i32, i32, i32, i32
  }
  func.func @transform_2(%arg0: i32, %arg1: i32, %arg2: i32, %arg3: i32) -> (i32, i32, i32, i32) {
    %c0_i32 = arith.constant 0 : i32
    %c0_i32_0 = arith.constant 0 : i32
    return %arg0, %arg1, %arg3, %c0_i32 : i32, i32, i32, i32
  }
  func.func @transform_3(%arg0: i32, %arg1: i32, %arg2: i32, %arg3: i32) -> (i32, i32, i32) {
    %c0_i32 = arith.constant 0 : i32
    %c0_i32_0 = arith.constant 0 : i32
    return %arg0, %c0_i32, %arg3 : i32, i32, i32
  }
  func.func @transform_4(%arg0: i32, %arg1: i32, %arg2: i32, %arg3: i32) -> (i32, i32, i32, i32) {
    %c0_i32 = arith.constant 0 : i32
    %c0_i32_0 = arith.constant 0 : i32
    return %arg0, %arg1, %arg2, %c0_i32 : i32, i32, i32, i32
  }
}

module attributes {stable_mosaic.version = 11 : i64} {
  func.func @_linear_res_ln_kernel(%arg0: i32, %arg1: memref<16x32xbf16, #tpu.memory_space<vmem>>, %arg2: memref<32x32xbf16, #tpu.memory_space<vmem>>, %arg3: memref<1x32xf32, #tpu.memory_space<vmem>>, %arg4: memref<16x32xbf16, #tpu.memory_space<vmem>>, %arg5: memref<1x32xf32, #tpu.memory_space<vmem>>, %arg6: memref<1x32xf32, #tpu.memory_space<vmem>>, %arg7: memref<16x32xbf16, #tpu.memory_space<vmem>>) attributes {dimension_semantics = [#tpu.dimension_semantics<parallel>], iteration_bounds = array<i64: 1>, scalar_prefetch = 0 : i64, scratch_operands = 0 : i64, tpu.core_type = #tpu.core_type<tc>, window_params = [{transform_indices = @transform_0, window_bounds = array<i64: 16, 32>}, {pipeline_mode = #tpu.pipeline_mode<synchronous>, transform_indices = @transform_1, window_bounds = array<i64: 32, 32>}, {pipeline_mode = #tpu.pipeline_mode<synchronous>, transform_indices = @transform_2, window_bounds = array<i64: 1, 32>}, {transform_indices = @transform_3, window_bounds = array<i64: 16, 32>}, {pipeline_mode = #tpu.pipeline_mode<synchronous>, transform_indices = @transform_4, window_bounds = array<i64: 1, 32>}, {pipeline_mode = #tpu.pipeline_mode<synchronous>, transform_indices = @transform_5, window_bounds = array<i64: 1, 32>}, {transform_indices = @transform_6, window_bounds = array<i64: 16, 32>}]} {
    %c0 = arith.constant 0 : index
    %c0_0 = arith.constant 0 : index
    %0 = vector.load %arg1[%c0, %c0_0] : memref<16x32xbf16, #tpu.memory_space<vmem>>, vector<16x32xbf16>
    %c0_1 = arith.constant 0 : index
    %c0_2 = arith.constant 0 : index
    %1 = vector.load %arg2[%c0_1, %c0_2] : memref<32x32xbf16, #tpu.memory_space<vmem>>, vector<32x32xbf16>
    %cst = arith.constant dense<0.000000e+00> : vector<16x32xf32>
    %2 = tpu.matmul %0, %1, %cst {dimension_numbers = #tpu.dot_dimension_numbers<[1], [0], [0], [1], [0, 0, 1, 1], [], []>} : vector<16x32xbf16>, vector<32x32xbf16>, vector<16x32xf32> -> vector<16x32xf32>
    %c0_3 = arith.constant 0 : index
    %c0_4 = arith.constant 0 : index
    %3 = vector.load %arg4[%c0_3, %c0_4] : memref<16x32xbf16, #tpu.memory_space<vmem>>, vector<16x32xbf16>
    %4 = arith.extf %3 : vector<16x32xbf16> to vector<16x32xf32>
    %5 = arith.addf %4, %2 : vector<16x32xf32>
    %c0_5 = arith.constant 0 : index
    %c0_6 = arith.constant 0 : index
    %6 = vector.load %arg3[%c0_5, %c0_6] : memref<1x32xf32, #tpu.memory_space<vmem>>, vector<1x32xf32>
    %7 = vector.broadcast %6 : vector<1x32xf32> to vector<16x32xf32>
    %8 = arith.addf %5, %7 : vector<16x32xf32>
    %cst_7 = arith.constant dense<0.000000e+00> : vector<16xf32>
    %9 = vector.multi_reduction <add>, %8, %cst_7 [1] : vector<16x32xf32> to vector<16xf32>
    %10 = vector.shape_cast %9 : vector<16xf32> to vector<16x1xf32>
    %cst_8 = arith.constant 3.200000e+01 : f32
    %11 = vector.broadcast %cst_8 : f32 to vector<16x1xf32>
    %12 = arith.divf %10, %11 : vector<16x1xf32>
    %13 = vector.broadcast %12 : vector<16x1xf32> to vector<16x32xf32>
    %14 = arith.subf %8, %13 : vector<16x32xf32>
    %15 = vector.broadcast %12 : vector<16x1xf32> to vector<16x32xf32>
    %16 = arith.subf %8, %15 : vector<16x32xf32>
    %17 = arith.mulf %14, %16 : vector<16x32xf32>
    %cst_9 = arith.constant dense<0.000000e+00> : vector<16xf32>
    %18 = vector.multi_reduction <add>, %17, %cst_9 [1] : vector<16x32xf32> to vector<16xf32>
    %19 = vector.shape_cast %18 : vector<16xf32> to vector<16x1xf32>
    %cst_10 = arith.constant 3.200000e+01 : f32
    %20 = vector.broadcast %cst_10 : f32 to vector<16x1xf32>
    %21 = arith.divf %19, %20 : vector<16x1xf32>
    %22 = vector.broadcast %12 : vector<16x1xf32> to vector<16x32xf32>
    %23 = arith.subf %8, %22 : vector<16x32xf32>
    %cst_11 = arith.constant 9.99999996E-13 : f32
    %24 = vector.broadcast %cst_11 : f32 to vector<16x1xf32>
    %25 = arith.addf %21, %24 : vector<16x1xf32>
    %26 = math.rsqrt %25 : vector<16x1xf32>
    %27 = vector.broadcast %26 : vector<16x1xf32> to vector<16x32xf32>
    %28 = arith.mulf %23, %27 : vector<16x32xf32>
    %c0_12 = arith.constant 0 : index
    %c0_13 = arith.constant 0 : index
    %29 = vector.load %arg5[%c0_12, %c0_13] : memref<1x32xf32, #tpu.memory_space<vmem>>, vector<1x32xf32>
    %30 = vector.broadcast %29 : vector<1x32xf32> to vector<16x32xf32>
    %31 = arith.mulf %28, %30 : vector<16x32xf32>
    %c0_14 = arith.constant 0 : index
    %c0_15 = arith.constant 0 : index
    %32 = vector.load %arg6[%c0_14, %c0_15] : memref<1x32xf32, #tpu.memory_space<vmem>>, vector<1x32xf32>
    %33 = vector.broadcast %32 : vector<1x32xf32> to vector<16x32xf32>
    %34 = arith.addf %31, %33 : vector<16x32xf32>
    %35 = arith.truncf %34 : vector<16x32xf32> to vector<16x32xbf16>
    %c0_16 = arith.constant 0 : index
    %c0_17 = arith.constant 0 : index
    %36 = vector.load %arg7[%c0_16, %c0_17] : memref<16x32xbf16, #tpu.memory_space<vmem>>, vector<16x32xbf16>
    tpu.vector_store %arg7[%c0_16, %c0_17], %35 {strides = array<i32>} : memref<16x32xbf16, #tpu.memory_space<vmem>>, vector<16x32xbf16>,
    return
  }
  func.func @transform_0(%arg0: i32) -> (i32, i32) {
    %c0_i32 = arith.constant 0 : i32
    %c0_i32_0 = arith.constant 0 : i32
    return %arg0, %c0_i32 : i32, i32
  }
  func.func @transform_1(%arg0: i32) -> (i32, i32) {
    %c0_i32 = arith.constant 0 : i32
    %c0_i32_0 = arith.constant 0 : i32
    %c0_i32_1 = arith.constant 0 : i32
    return %c0_i32, %c0_i32_0 : i32, i32
  }
  func.func @transform_2(%arg0: i32) -> (i32, i32) {
    %c0_i32 = arith.constant 0 : i32
    %c0_i32_0 = arith.constant 0 : i32
    %c0_i32_1 = arith.constant 0 : i32
    return %c0_i32, %c0_i32_0 : i32, i32
  }
  func.func @transform_3(%arg0: i32) -> (i32, i32) {
    %c0_i32 = arith.constant 0 : i32
    %c0_i32_0 = arith.constant 0 : i32
    return %arg0, %c0_i32 : i32, i32
  }
  func.func @transform_4(%arg0: i32) -> (i32, i32) {
    %c0_i32 = arith.constant 0 : i32
    %c0_i32_0 = arith.constant 0 : i32
    %c0_i32_1 = arith.constant 0 : i32
    return %c0_i32, %c0_i32_0 : i32, i32
  }
  func.func @transform_5(%arg0: i32) -> (i32, i32) {
    %c0_i32 = arith.constant 0 : i32
    %c0_i32_0 = arith.constant 0 : i32
    %c0_i32_1 = arith.constant 0 : i32
    return %c0_i32, %c0_i32_0 : i32, i32
  }
  func.func @transform_6(%arg0: i32) -> (i32, i32) {
    %c0_i32 = arith.constant 0 : i32
    %c0_i32_0 = arith.constant 0 : i32
    return %arg0, %c0_i32 : i32, i32
  }
}

module attributes {stable_mosaic.version = 11 : i64} {
  func.func @_ffn_kernel(%arg0: i32, %arg1: i32, %arg2: memref<16x32xbf16, #tpu.memory_space<vmem>>, %arg3: memref<32x64xbf16, #tpu.memory_space<vmem>>, %arg4: memref<1x64xf32, #tpu.memory_space<vmem>>, %arg5: memref<64x32xbf16, #tpu.memory_space<vmem>>, %arg6: memref<1x32xf32, #tpu.memory_space<vmem>>, %arg7: memref<16x32xbf16, #tpu.memory_space<vmem>>, %arg8: memref<1x32xf32, #tpu.memory_space<vmem>>, %arg9: memref<1x32xf32, #tpu.memory_space<vmem>>, %arg10: memref<16x32xbf16, #tpu.memory_space<vmem>>, %arg11: memref<16x32xf32, #tpu.memory_space<vmem>>) attributes {dimension_semantics = [#tpu.dimension_semantics<parallel>, #tpu.dimension_semantics<arbitrary>], iteration_bounds = array<i64: 1, 1>, scalar_prefetch = 0 : i64, scratch_operands = 1 : i64, tpu.core_type = #tpu.core_type<tc>, window_params = [{transform_indices = @transform_0, window_bounds = array<i64: 16, 32>}, {transform_indices = @transform_1, window_bounds = array<i64: 32, 64>}, {transform_indices = @transform_2, window_bounds = array<i64: 1, 64>}, {transform_indices = @transform_3, window_bounds = array<i64: 64, 32>}, {pipeline_mode = #tpu.pipeline_mode<synchronous>, transform_indices = @transform_4, window_bounds = array<i64: 1, 32>}, {transform_indices = @transform_5, window_bounds = array<i64: 16, 32>}, {pipeline_mode = #tpu.pipeline_mode<synchronous>, transform_indices = @transform_6, window_bounds = array<i64: 1, 32>}, {pipeline_mode = #tpu.pipeline_mode<synchronous>, transform_indices = @transform_7, window_bounds = array<i64: 1, 32>}, {transform_indices = @transform_8, window_bounds = array<i64: 16, 32>}]} {
    %c0_i32 = arith.constant 0 : i32
    %0 = arith.cmpi eq, %arg1, %c0_i32 : i32
    %1 = arith.extui %0 : i1 to i32
    %c0_i32_0 = arith.constant 0 : i32
    %2 = arith.cmpi ne, %1, %c0_i32_0 : i32
    scf.if %2 {
      %cst_19 = arith.constant 0.000000e+00 : f32
      %31 = vector.broadcast %cst_19 : f32 to vector<16x32xf32>
      %c0_20 = arith.constant 0 : index
      %c0_21 = arith.constant 0 : index
      %32 = vector.load %arg11[%c0_20, %c0_21] : memref<16x32xf32, #tpu.memory_space<vmem>>, vector<16x32xf32>
      tpu.vector_store %arg11[%c0_20, %c0_21], %31 {strides = array<i32>} : memref<16x32xf32, #tpu.memory_space<vmem>>, vector<16x32xf32>,
    } else {
    }
    %c0 = arith.constant 0 : index
    %c0_1 = arith.constant 0 : index
    %3 = vector.load %arg2[%c0, %c0_1] : memref<16x32xbf16, #tpu.memory_space<vmem>>, vector<16x32xbf16>
    %c0_2 = arith.constant 0 : index
    %c0_3 = arith.constant 0 : index
    %4 = vector.load %arg3[%c0_2, %c0_3] : memref<32x64xbf16, #tpu.memory_space<vmem>>, vector<32x64xbf16>
    %cst = arith.constant dense<0.000000e+00> : vector<16x64xf32>
    %5 = tpu.matmul %3, %4, %cst {dimension_numbers = #tpu.dot_dimension_numbers<[1], [0], [0], [1], [0, 0, 1, 1], [], []>} : vector<16x32xbf16>, vector<32x64xbf16>, vector<16x64xf32> -> vector<16x64xf32>
    %c0_4 = arith.constant 0 : index
    %c0_5 = arith.constant 0 : index
    %6 = vector.load %arg4[%c0_4, %c0_5] : memref<1x64xf32, #tpu.memory_space<vmem>>, vector<1x64xf32>
    %7 = vector.broadcast %6 : vector<1x64xf32> to vector<16x64xf32>
    %8 = arith.addf %5, %7 : vector<16x64xf32>
    %cst_6 = arith.constant 5.000000e-01 : f32
    %9 = vector.broadcast %cst_6 : f32 to vector<16x64xf32>
    %10 = arith.mulf %9, %8 : vector<16x64xf32>
    %cst_7 = arith.constant 4.471500e-02 : f32
    %11 = vector.broadcast %cst_7 : f32 to vector<16x64xf32>
    %12 = arith.mulf %11, %8 : vector<16x64xf32>
    %13 = arith.mulf %12, %8 : vector<16x64xf32>
    %14 = arith.mulf %13, %8 : vector<16x64xf32>
    %15 = arith.addf %8, %14 : vector<16x64xf32>
    %cst_8 = arith.constant 0.797884583 : f32
    %16 = vector.broadcast %cst_8 : f32 to vector<16x64xf32>
    %17 = arith.mulf %16, %15 : vector<16x64xf32>
    %18 = math.tanh %17 : vector<16x64xf32>
    %cst_9 = arith.constant 1.000000e+00 : f32
    %19 = vector.broadcast %cst_9 : f32 to vector<16x64xf32>
    %20 = arith.addf %19, %18 : vector<16x64xf32>
    %21 = arith.mulf %10, %20 : vector<16x64xf32>
    %c0_10 = arith.constant 0 : index
    %c0_11 = arith.constant 0 : index
    %22 = vector.load %arg11[%c0_10, %c0_11] : memref<16x32xf32, #tpu.memory_space<vmem>>, vector<16x32xf32>
    %23 = arith.truncf %21 : vector<16x64xf32> to vector<16x64xbf16>
    %c0_12 = arith.constant 0 : index
    %c0_13 = arith.constant 0 : index
    %24 = vector.load %arg5[%c0_12, %c0_13] : memref<64x32xbf16, #tpu.memory_space<vmem>>, vector<64x32xbf16>
    %cst_14 = arith.constant dense<0.000000e+00> : vector<16x32xf32>
    %25 = tpu.matmul %23, %24, %cst_14 {dimension_numbers = #tpu.dot_dimension_numbers<[1], [0], [0], [1], [0, 0, 1, 1], [], []>} : vector<16x64xbf16>, vector<64x32xbf16>, vector<16x32xf32> -> vector<16x32xf32>
    %26 = arith.addf %22, %25 : vector<16x32xf32>
    %c0_15 = arith.constant 0 : index
    %c0_16 = arith.constant 0 : index
    %27 = vector.load %arg11[%c0_15, %c0_16] : memref<16x32xf32, #tpu.memory_space<vmem>>, vector<16x32xf32>
    tpu.vector_store %arg11[%c0_15, %c0_16], %26 {strides = array<i32>} : memref<16x32xf32, #tpu.memory_space<vmem>>, vector<16x32xf32>,
    %c0_i32_17 = arith.constant 0 : i32
    %28 = arith.cmpi eq, %arg1, %c0_i32_17 : i32
    %29 = arith.extui %28 : i1 to i32
    %c0_i32_18 = arith.constant 0 : i32
    %30 = arith.cmpi ne, %29, %c0_i32_18 : i32
    scf.if %30 {
      %c0_19 = arith.constant 0 : index
      %c0_20 = arith.constant 0 : index
      %31 = vector.load %arg7[%c0_19, %c0_20] : memref<16x32xbf16, #tpu.memory_space<vmem>>, vector<16x32xbf16>
      %32 = arith.extf %31 : vector<16x32xbf16> to vector<16x32xf32>
      %c0_21 = arith.constant 0 : index
      %c0_22 = arith.constant 0 : index
      %33 = vector.load %arg11[%c0_21, %c0_22] : memref<16x32xf32, #tpu.memory_space<vmem>>, vector<16x32xf32>
      %34 = arith.addf %32, %33 : vector<16x32xf32>
      %c0_23 = arith.constant 0 : index
      %c0_24 = arith.constant 0 : index
      %35 = vector.load %arg6[%c0_23, %c0_24] : memref<1x32xf32, #tpu.memory_space<vmem>>, vector<1x32xf32>
      %36 = vector.broadcast %35 : vector<1x32xf32> to vector<16x32xf32>
      %37 = arith.addf %34, %36 : vector<16x32xf32>
      %cst_25 = arith.constant dense<0.000000e+00> : vector<16xf32>
      %38 = vector.multi_reduction <add>, %37, %cst_25 [1] : vector<16x32xf32> to vector<16xf32>
      %39 = vector.shape_cast %38 : vector<16xf32> to vector<16x1xf32>
      %cst_26 = arith.constant 3.200000e+01 : f32
      %40 = vector.broadcast %cst_26 : f32 to vector<16x1xf32>
      %41 = arith.divf %39, %40 : vector<16x1xf32>
      %42 = vector.broadcast %41 : vector<16x1xf32> to vector<16x32xf32>
      %43 = arith.subf %37, %42 : vector<16x32xf32>
      %44 = vector.broadcast %41 : vector<16x1xf32> to vector<16x32xf32>
      %45 = arith.subf %37, %44 : vector<16x32xf32>
      %46 = arith.mulf %43, %45 : vector<16x32xf32>
      %cst_27 = arith.constant dense<0.000000e+00> : vector<16xf32>
      %47 = vector.multi_reduction <add>, %46, %cst_27 [1] : vector<16x32xf32> to vector<16xf32>
      %48 = vector.shape_cast %47 : vector<16xf32> to vector<16x1xf32>
      %cst_28 = arith.constant 3.200000e+01 : f32
      %49 = vector.broadcast %cst_28 : f32 to vector<16x1xf32>
      %50 = arith.divf %48, %49 : vector<16x1xf32>
      %51 = vector.broadcast %41 : vector<16x1xf32> to vector<16x32xf32>
      %52 = arith.subf %37, %51 : vector<16x32xf32>
      %cst_29 = arith.constant 9.99999996E-13 : f32
      %53 = vector.broadcast %cst_29 : f32 to vector<16x1xf32>
      %54 = arith.addf %50, %53 : vector<16x1xf32>
      %55 = math.rsqrt %54 : vector<16x1xf32>
      %56 = vector.broadcast %55 : vector<16x1xf32> to vector<16x32xf32>
      %57 = arith.mulf %52, %56 : vector<16x32xf32>
      %c0_30 = arith.constant 0 : index
      %c0_31 = arith.constant 0 : index
      %58 = vector.load %arg8[%c0_30, %c0_31] : memref<1x32xf32, #tpu.memory_space<vmem>>, vector<1x32xf32>
      %59 = vector.broadcast %58 : vector<1x32xf32> to vector<16x32xf32>
      %60 = arith.mulf %57, %59 : vector<16x32xf32>
      %c0_32 = arith.constant 0 : index
      %c0_33 = arith.constant 0 : index
      %61 = vector.load %arg9[%c0_32, %c0_33] : memref<1x32xf32, #tpu.memory_space<vmem>>, vector<1x32xf32>
      %62 = vector.broadcast %61 : vector<1x32xf32> to vector<16x32xf32>
      %63 = arith.addf %60, %62 : vector<16x32xf32>
      %64 = arith.truncf %63 : vector<16x32xf32> to vector<16x32xbf16>
      %c0_34 = arith.constant 0 : index
      %c0_35 = arith.constant 0 : index
      %65 = vector.load %arg10[%c0_34, %c0_35] : memref<16x32xbf16, #tpu.memory_space<vmem>>, vector<16x32xbf16>
      tpu.vector_store %arg10[%c0_34, %c0_35], %64 {strides = array<i32>} : memref<16x32xbf16, #tpu.memory_space<vmem>>, vector<16x32xbf16>,
    } else {
    }
    return
  }
  func.func @transform_0(%arg0: i32, %arg1: i32) -> (i32, i32) {
    %c0_i32 = arith.constant 0 : i32
    %c0_i32_0 = arith.constant 0 : i32
    return %arg0, %c0_i32 : i32, i32
  }
  func.func @transform_1(%arg0: i32, %arg1: i32) -> (i32, i32) {
    %c0_i32 = arith.constant 0 : i32
    %c0_i32_0 = arith.constant 0 : i32
    return %c0_i32, %arg1 : i32, i32
  }
  func.func @transform_2(%arg0: i32, %arg1: i32) -> (i32, i32) {
    %c0_i32 = arith.constant 0 : i32
    %c0_i32_0 = arith.constant 0 : i32
    return %c0_i32, %arg1 : i32, i32
  }
  func.func @transform_3(%arg0: i32, %arg1: i32) -> (i32, i32) {
    %c0_i32 = arith.constant 0 : i32
    %c0_i32_0 = arith.constant 0 : i32
    return %arg1, %c0_i32 : i32, i32
  }
  func.func @transform_4(%arg0: i32, %arg1: i32) -> (i32, i32) {
    %c0_i32 = arith.constant 0 : i32
    %c0_i32_0 = arith.constant 0 : i32
    %c0_i32_1 = arith.constant 0 : i32
    return %c0_i32, %c0_i32_0 : i32, i32
  }
  func.func @transform_5(%arg0: i32, %arg1: i32) -> (i32, i32) {
    %c0_i32 = arith.constant 0 : i32
    %c0_i32_0 = arith.constant 0 : i32
    return %arg0, %c0_i32 : i32, i32
  }
  func.func @transform_6(%arg0: i32, %arg1: i32) -> (i32, i32) {
    %c0_i32 = arith.constant 0 : i32
    %c0_i32_0 = arith.constant 0 : i32
    %c0_i32_1 = arith.constant 0 : i32
    return %c0_i32, %c0_i32_0 : i32, i32
  }
  func.func @transform_7(%arg0: i32, %arg1: i32) -> (i32, i32) {
    %c0_i32 = arith.constant 0 : i32
    %c0_i32_0 = arith.constant 0 : i32
    %c0_i32_1 = arith.constant 0 : i32
    return %c0_i32, %c0_i32_0 : i32, i32
  }
  func.func @transform_8(%arg0: i32, %arg1: i32) -> (i32, i32) {
    %c0_i32 = arith.constant 0 : i32
    %c0_i32_0 = arith.constant 0 : i32
    return %arg0, %c0_i32 : i32, i32
  }
}

module attributes {stable_mosaic.version = 11 : i64} {
  func.func @_pool_cls_kernel(%arg0: memref<2x32xbf16, #tpu.memory_space<vmem>>, %arg1: memref<32x32xbf16, #tpu.memory_space<vmem>>, %arg2: memref<1x32xf32, #tpu.memory_space<vmem>>, %arg3: memref<32x128xbf16, #tpu.memory_space<vmem>>, %arg4: memref<1x128xf32, #tpu.memory_space<vmem>>, %arg5: memref<2x128xf32, #tpu.memory_space<vmem>>) attributes {dimension_semantics = [], scalar_prefetch = 0 : i64, scratch_operands = 0 : i64, tpu.core_type = #tpu.core_type<tc>} {
    %c0 = arith.constant 0 : index
    %c0_0 = arith.constant 0 : index
    %0 = vector.load %arg0[%c0, %c0_0] : memref<2x32xbf16, #tpu.memory_space<vmem>>, vector<2x32xbf16>
    %c0_1 = arith.constant 0 : index
    %c0_2 = arith.constant 0 : index
    %1 = vector.load %arg1[%c0_1, %c0_2] : memref<32x32xbf16, #tpu.memory_space<vmem>>, vector<32x32xbf16>
    %cst = arith.constant dense<0.000000e+00> : vector<2x32xf32>
    %2 = tpu.matmul %0, %1, %cst {dimension_numbers = #tpu.dot_dimension_numbers<[1], [0], [0], [1], [0, 0, 1, 1], [], []>} : vector<2x32xbf16>, vector<32x32xbf16>, vector<2x32xf32> -> vector<2x32xf32>
    %c0_3 = arith.constant 0 : index
    %c0_4 = arith.constant 0 : index
    %3 = vector.load %arg2[%c0_3, %c0_4] : memref<1x32xf32, #tpu.memory_space<vmem>>, vector<1x32xf32>
    %4 = vector.broadcast %3 : vector<1x32xf32> to vector<2x32xf32>
    %5 = arith.addf %2, %4 : vector<2x32xf32>
    %6 = math.tanh %5 : vector<2x32xf32>
    %7 = arith.truncf %6 : vector<2x32xf32> to vector<2x32xbf16>
    %c0_5 = arith.constant 0 : index
    %c0_6 = arith.constant 0 : index
    %8 = vector.load %arg3[%c0_5, %c0_6] : memref<32x128xbf16, #tpu.memory_space<vmem>>, vector<32x128xbf16>
    %cst_7 = arith.constant dense<0.000000e+00> : vector<2x128xf32>
    %9 = tpu.matmul %7, %8, %cst_7 {dimension_numbers = #tpu.dot_dimension_numbers<[1], [0], [0], [1], [0, 0, 1, 1], [], []>} : vector<2x32xbf16>, vector<32x128xbf16>, vector<2x128xf32> -> vector<2x128xf32>
    %c0_8 = arith.constant 0 : index
    %c0_9 = arith.constant 0 : index
    %10 = vector.load %arg4[%c0_8, %c0_9] : memref<1x128xf32, #tpu.memory_space<vmem>>, vector<1x128xf32>
    %11 = vector.broadcast %10 : vector<1x128xf32> to vector<2x128xf32>
    %12 = arith.addf %9, %11 : vector<2x128xf32>
    %c0_10 = arith.constant 0 : index
    %c0_11 = arith.constant 0 : index
    %13 = vector.load %arg5[%c0_10, %c0_11] : memref<2x128xf32, #tpu.memory_space<vmem>>, vector<2x128xf32>
    tpu.vector_store %arg5[%c0_10, %c0_11], %12 {strides = array<i32>} : memref<2x128xf32, #tpu.memory_space<vmem>>, vector<2x128xf32>,
    return
  }
}

</mosaic_0001>

<bundles_post_ra>
// kernel: reward_model_forward.11
= control target key start
LH: loop header
LB: loop body
LE: loop exit
PB: predicated region body
PF: predicated region fallthrough
CT: control target
= control target key end

     0   :  { %v130_v0 = vmov 0.0   ;;  %vm131_vm0 = vmmov 0   ;;  %vm45_vm1 = vcmask 261120   ;;  %vm98_vm2 = vcmask 781312   ;;  %s170_s1 = inlined_call_operand.vmem [shape: bf16[32,96], index: 1, kind: input, shape index: {}]   ;;  %s171_s0 = inlined_call_operand.vmem [shape: bf16[16,32], index: 0, kind: input, shape index: {}]   ;;  %s172_s2 = inlined_call_operand.vmem [shape: f32[1,96], index: 2, kind: input, shape index: {}]   ;;  %s173_s3 = inlined_call_operand.vmem [shape: bf16[16,96], index: 3, kind: output, shape index: {}]  }
   0x1   :  { %117 = vmatprep.subr.bf16.mxu0 %v130_v0  ;;  %v127_v1 = vld [vmem:[%s170_s1 + $0x8] sm:$0xff]   ;;  %121 = vmatprep.mubr.msk.bf16.mxu0 %vm131_vm0, %v130_v0  ;;  %v128_v2 = vld [vmem:[%s170_s1] sm:$0xff]  }
   0x2   :  { %118 = vmatpush3.bf16.msra.mxu0 %v127_v1  ;;  %v129_v3 = vld [vmem:[%s171_s0] sm:$0xff]  }
   0x3   :  { %119 = vmatprep.subr.bf16.mxu0 %v130_v0  ;;  %v105_v4 = vld [vmem:[%s172_s2] ss:$0 sm:$0xff] }
   0x6   :  { %120 = vmatpush3.bf16.msra.mxu0 %v128_v2 }
   0x9   :  { %122 = vmatmul.mubr.msk.bf16.vlgmr.msra.gmra.mxu0 %vm45_vm1, %v129_v3 }
  0xc9   :  { %v83_v5 = vpop.f32.mrf.mxu0 }
  0xca   :  { %v84_v6 = vadd.f32 %v105_v4, %v83_v5 }
  0xcb   :  { %v123_v7 = vpop.f32.mrf.mxu0 }
  0xcc   :  { %v112_v8 = vpack.c.bf16 %v84_v6, %v84_v6 }
  0xcd   :  { %v86_v9 = vpop.f32.mrf.mxu0 }
  0xce   :  { %99 = vst.msk [vmem:[%s173_s3] sm:$0xf] %vm98_vm2, %v112_v8  ;;  %v87_v10 = vadd.f32 %v105_v4, %v86_v9 }
  0xcf   :  { %v124_v11 = vpop.f32.mrf.mxu0 }
  0xd0   :  { %v113_v12 = vpack.c.bf16 %v87_v10, %v87_v10 }
  0xd2   :  { %100 = vst.msk [vmem:[%s173_s3 + $0x4] sm:$0xf] %vm98_vm2, %v113_v12 }

// kernel: reward_model_forward.10
= control target key start
LH: loop header
LB: loop body
LE: loop exit
PB: predicated region body
PF: predicated region fallthrough
CT: control target
= control target key end

     0   :  { %vm16_vm0 = vcmask 261120   ;;  %vm70_vm1 = vcmask 257024   ;;  %s129_s0 = inlined_call_operand.vmem [shape: f32[16,32], index: 0, kind: input, shape index: {}]   ;;  %s130_s1 = inlined_call_operand.vmem [shape: f32[1,32], index: 1, kind: input, shape index: {}]   ;;  %s131_s2 = inlined_call_operand.vmem [shape: f32[1,32], index: 2, kind: input, shape index: {}]   ;;  %s132_s3 = inlined_call_operand.vmem [shape: bf16[16,32], index: 3, kind: output, shape index: {}]  }
   0x1   :  { %v14_v0 = vld [vmem:[%s129_s0] sm:$0xff]  ;;  %v15_v1 = vld [vmem:[%s129_s0 + $0x8] sm:$0xff] }
   0x2   :  { %v17_v2 = vsel %vm16_vm0, %v14_v0, 0.0  ;;  %v20_v3 = vsel %vm16_vm0, %v15_v1, 0.0  ;;  %v77_v21 = vld [vmem:[%s130_s1] ss:$0 sm:$0xff] }
   0x3   :  { %18 = vadd.xlane.f32.xlu0 %v17_v2  ;;  %v78_v23 = vld [vmem:[%s131_s2] ss:$0 sm:$0xff] }
   0x7   :  { %21 = vadd.xlane.f32.xlu0 %v20_v3 }
  0x8c   :  { %v19_v4 = vpop.xlane.xlu0 %18 }
  0x8d   :  { %v24_v5 = vmul.f32 0.03125, %v19_v4 }
  0x8f   :  { %v26_v6 = vsub.f32 %v14_v0, %v24_v5 }
  0x90   :  { %v22_v7 = vpop.xlane.xlu0 %21 }
  0x91   :  { %v25_v8 = vmul.f32 0.03125, %v22_v7  ;;  %v28_v9 = vmul.f32 %v26_v6, %v26_v6 }
  0x93   :  { %v27_v10 = vsub.f32 %v15_v1, %v25_v8  ;;  %v30_v11 = vsel %vm16_vm0, %v28_v9, 0.0 }
  0x94   :  { %31 = vadd.xlane.f32.xlu1 %v30_v11 }
  0x95   :  { %v29_v12 = vmul.f32 %v27_v10, %v27_v10 }
  0x97   :  { %v33_v13 = vsel %vm16_vm0, %v29_v12, 0.0 }
  0x98   :  { %34 = vadd.xlane.f32.xlu1 %v33_v13 }
 0x11d   :  { %v32_v14 = vpop.xlane.xlu1 %31 }
 0x11e   :  { %v36_v15 = vmul.f32 0.03125, %v32_v14 }
 0x120   :  { %v38_v16 = vadd.f32 1e-12, %v36_v15 }
 0x121   :  { %v35_v17 = vpop.xlane.xlu1 %34 }
 0x122   :  { %83 = vrsqrt.f32 %v38_v16  ;;  %v37_v18 = vmul.f32 0.03125, %v35_v17 }
 0x124   :  { %v39_v19 = vadd.f32 1e-12, %v37_v18 }
 0x126   :  { %85 = vrsqrt.f32 %v39_v19 }
 0x12f   :  { %v84_v20 = vpop.eup %83 }
 0x130   :  { %v42_v22 = vmul.f32 %v84_v20, %v26_v6 }
 0x132   :  { %v51_v24 = vmul.f32 %v77_v21, %v42_v22 }
 0x133   :  { %v86_v25 = vpop.eup %85 }
 0x134   :  { %v60_v26 = vadd.f32 %v78_v23, %v51_v24  ;;  %v43_v27 = vmul.f32 %v86_v25, %v27_v10 }
 0x136   :  { %v81_v28 = vpack.c.bf16 %v60_v26, %v60_v26  ;;  %v52_v29 = vmul.f32 %v77_v21, %v43_v27 }
 0x138   :  { %71 = vst.msk [vmem:[%s132_s3] sm:$0xf] %vm70_vm1, %v81_v28  ;;  %v61_v30 = vadd.f32 %v78_v23, %v52_v29 }
 0x13a   :  { %v82_v31 = vpack.c.bf16 %v61_v30, %v61_v30 }
 0x13c   :  { %72 = vst.msk [vmem:[%s132_s3 + $0x4] sm:$0xf] %vm70_vm1, %v82_v31 }

// kernel: reward_model_forward.12
= control target key start
LH: loop header
LB: loop body
LE: loop exit
PB: predicated region body
PF: predicated region fallthrough
CT: control target
= control target key end

     0   :  { %s852_s15 = smov 0   ;;  %s854_s16 = smov 0   ;;  %s929_s0 = inlined_call_operand.vmem [shape: bf16[2,2,8,16], index: 0, kind: input, shape index: {}]   ;;  %s930_s1 = inlined_call_operand.vmem [shape: bf16[2,2,8,16], index: 1, kind: input, shape index: {}]   ;;  %s931_s2 = inlined_call_operand.vmem [shape: bf16[2,2,8,16], index: 2, kind: input, shape index: {}]   ;;  %s932_s3 = inlined_call_operand.vmem [shape: f32[2,1,8], index: 3, kind: input, shape index: {}]   ;;  %s933_s4 = inlined_call_operand.vmem [shape: bf16[2,2,8,16], index: 4, kind: output, shape index: {}]  }
   0x1   :  { %s856_s17 = smov 0   ;;  %s858_s18 = smov 0  }
   0x2   :  { %s860_s19 = smov 0  }
   0x3 LB: > { %s36_s20 = sadd.s32 1, %s813_s17  ;;  %s40_s21 = sadd.s32 1, %s817_s18  ;;  %s821_s19 = sphi %s860_s19, %s14_s19   ;;  %s817_s18 = sphi %s858_s18, %s937_s18   ;;  %s813_s17 = sphi %s856_s17, %s936_s17   ;;  %s809_s16 = sphi %s854_s16, %s935_s16   ;;  %s805_s15 = sphi %s852_s15, %s934_s15  }
   0x4   : > { %p38_p0 = scmp.ge.s32.totalorder %s36_s20, 2  ;;  %p701_p1 = scmp.ge.s32.totalorder %s821_s19, 1 }
   0x5   : > { %p255_p2 = scmp.lt.s32.totalorder %s821_s19, 5 }
   0x6   : > { %s939_s20 = smov (%p38_p0, %s36_s20), 0  ;;  %s941_s21 = smov (!%p38_p0, %s40_s21), %s817_s18 }
   0x7   : > { %p256_p3 = pnand %p701_p1, %p255_p2  ;;  %p42_p4 = scmp.ge.s32.totalorder %s941_s21, 2 }
   0x8   : > { %p321_p5 = scmp.lt.s32.totalorder (!%p256_p3), %s809_s16, 1  ;;  %p323_p6 = scmp.lt.s32.totalorder (!%p256_p3), %s805_s15, 1 }
   0x9   : > { %s943_s21 = smov (%p42_p4, %s941_s21), 0  ;;  %259 = sbr.rel (%p256_p3) target bundleno = 800 (0x320), region = 36 }
   0xe   : > { %vm379_vm0 = vcmask 130048   ;;  %v823_v0 = vmov 0.0   ;;  %vm824_vm1 = vmmov 0   ;;  %s945_s16 = smov (!%p321_p5, %s809_s16), 1  ;;  %s947_s15 = smov (!%p323_p6, %s805_s15), 1  ;;  %vm376_vm2 = vcmask 7168  }
   0xf   : > { %719 = vmatprep.subr.bf16.mxu0 %v823_v0  ;;  %380 = vst.msk [vmem:[#allocation4] sm:$0xff] %vm379_vm0, %v823_v0  ;;  %721 = vmatprep.mubr.msk.bf16.mxu0 %vm824_vm1, %v823_v0  ;;  %s702_s22 = sshll.u32 %s945_s16, 1  ;;  %v825_v4 = vmov -inf   ;;  %s359_s7 = scalar_lea.vmem %s932_s3, %s945_s16  ;;  %vm441_vm3 = vcmask 64512   ;;  %v826_v13 = vmov 0   ;;  %vm476_vm4 = vcmask 1043456  }
  0x10   : > { %725 = vmatprep.subr.bf16.mxu1 %v823_v0  ;;  %727 = vmatprep.mubr.msk.bf16.mxu1 %vm824_vm1, %v823_v0  ;;  %s329_s23 = sadd.s32 %s702_s22, %s947_s15  ;;  %377 = vst.msk [vmem:[#allocation2] sm:$0xff] %vm376_vm2, %v825_v4  ;;  %378 = vst.msk [vmem:[#allocation3] sm:$0xff] %vm376_vm2, %v823_v0  ;;  %v711_v6 = vld [vmem:[%s359_s7] ss:$0 sm:$0xff]  ;;  %vm536_vm5 = vcmask 125952  }
  0x11   : > { %s883_s24 = sshll.u32 %s329_s23, 2  ;;  %775 = vset.pattern.permute.xlu0 %v826_v13  ;;  %776 = vset.pattern.permute.xlu1 %v826_v13 }
  0x12   : > { %s342_s27 = scalar_lea.vmem %s930_s1, %s883_s24  ;;  %s331_s30 = scalar_lea.vmem %s929_s0, %s883_s24 }
  0x13   : > { %v382_v1 = vld [vmem:[%s342_s27] sm:$0xf]  ;;  %s353_s10 = scalar_lea.vmem %s931_s2, %s883_s24  ;;  %s370_s13 = scalar_lea.vmem %s933_s4, %s883_s24 }
  0x14   : > { %v389_v2 = vsel %vm379_vm0, %v382_v1, 0  ;;  %v381_v3 = vld [vmem:[%s331_s30] sm:$0xf] }
  0x15   : > { %720 = vmatpush3.bf16.xpose.msra.mxu0 %v389_v2  ;;  %v383_v18 = vld [vmem:[%s353_s10] sm:$0xf] }
  0x16   : > { %v478_v19 = vsel %vm476_vm4, %v383_v18, 0  ;;  %v465_v34 = vld [vmem:[#allocation4] sm:$0xff] }
  0x17   : > { %v440_v14 = vld [vmem:[#allocation2] sm:$0xff]  ;;  %726 = vmatpush3.bf16.msra.mxu1 %v478_v19  ;;  %v457_v28 = vld [vmem:[#allocation3] sm:$0xff] }
  0x1c   : > { %722 = vmatmul.mubr.msk.bf16.vlgmr.msra.gmra.mxu0 %vm379_vm0, %v381_v3 }
  0xdc   : > { %v425_v5 = vpop.f32.mrf.mxu0 }
  0xdd   : > { %v431_v7 = vmul.f32 0.25, %v425_v5 }
  0xde   : > { %v723_v8 = vpop.f32.mrf.mxu0 }
  0xdf   : > { %v439_v9 = vadd.f32 %v711_v6, %v431_v7 }
  0xe0   : > { %v428_v10 = vpop.f32.mrf.mxu0 }
  0xe1   : > { %v442_v11 = vsel %vm441_vm3, %v439_v9, -inf }
  0xe2   : > { %443 = vmax.xlane.f32.xlu0 %v442_v11  ;;  %v724_v12 = vpop.f32.mrf.mxu0 }
 0x16b   : > { %v444_v15 = vpop.xlane.xlu0 %443 }
 0x16c   : > { %v445_v16 = vmax.f32 %v440_v14, %v444_v15 }
 0x16e   : > { %v446_v17 = vsub.f32 %v440_v14, %v445_v16  ;;  %522 = vst.msk [vmem:[#allocation2] sm:$0xff] %vm376_vm2, %v445_v16  ;;  %451 = vperm.xlu0 %775, %v445_v16  }
 0x170   : > { %v447_v24 = vmul.f32 1.442695, %v446_v17 }
 0x1e9   : > { %v452_v20 = vpop.permute.xlu0 %451 }
 0x1ea   : > { %v454_v21 = vsub.f32 %v439_v9, %v452_v20 }
 0x1ec   : > { %v455_v22 = vmul.f32 1.442695, %v454_v21 }
 0x1ee   : > { %777 = vpow2.f32 %v455_v22 }
 0x1ef   : > { %779 = vpow2.f32 %v447_v24 }
 0x1fb   : > { %v778_v23 = vpop.eup %777 }
 0x1fc   : > { %v459_v25 = vsel %vm441_vm3, %v778_v23, 0.0  ;;  %v472_v26 = vpack.c.bf16 %v778_v23, %v778_v23  ;;  %v780_v27 = vpop.eup %779 }
 0x1fd   : > { %460 = vadd.xlane.f32.xlu1 %v459_v25  ;;  %v458_v29 = vmul.f32 %v780_v27, %v457_v28 }
 0x1fe   : > { %728 = vmatmul.mubr.msk.bf16.vlgmr.msra.gmra.mxu1 %vm441_vm3, %v472_v26 }
 0x20e   : > { %468 = vperm.xlu1 %776, %v780_v27  }
 0x286   : > { %v461_v30 = vpop.xlane.xlu1 %460 }
 0x287   : > { %v462_v31 = vadd.f32 %v461_v30, %v458_v29 }
 0x289   : > { %464 = vst.msk [vmem:[#allocation3] sm:$0xff] %vm376_vm2, %v462_v31 }
 0x28a   : > { %v469_v35 = vpop.permute.xlu1 %468 }
 0x28b   : > { %v471_v36 = vmul.f32 %v469_v35, %v465_v34 }
 0x290   : > { %v526_v32 = vld [vmem:[#allocation3] sm:$0xff] }
 0x291   : > { %781 = vrcp.f32 %v526_v32 }
 0x29e   : > { %v782_v33 = vpop.eup %781 }
 0x29f   : > { %531 = vperm.xlu1 %776, %v782_v33  }
 0x2be   : > { %v514_v37 = vpop.f32.mrf.mxu1 }
 0x2bf   : > { %v520_v38 = vadd.f32 %v514_v37, %v471_v36 }
 0x2c0   : > { %v729_v39 = vpop.f32.mrf.mxu1 }
 0x2c1   : > { %521 = vst.msk [vmem:[#allocation4] sm:$0xff] %vm379_vm0, %v520_v38 }
 0x2c2   : > { %v517_v40 = vpop.f32.mrf.mxu1 }
 0x2c4   : > { %v730_v41 = vpop.f32.mrf.mxu1 }
 0x2c8   : > { %v528_v42 = vld [vmem:[#allocation4] sm:$0xff] }
 0x31a   : > { %v532_v43 = vpop.permute.xlu1 %531 }
 0x31b   : > { %v534_v44 = vmul.f32 %v532_v43, %v528_v42 }
 0x31d   : > { %v535_v45 = vpack.c.bf16 %v534_v44, %v534_v44 }
 0x31f   : > { %537 = vst.msk [vmem:[%s370_s13] sm:$0xf] %vm536_vm5, %v535_v45 }
 0x320 PF: > { %s14_s19 = sadd.s32 1, %s821_s19   ;;  %s934_s15 = smov %s813_s17 }
 0x321   : > { %p11_p7 = scmp.ge.s32.totalorder %s14_s19, 6   ;;  %s935_s16 = smov %s817_s18 }
 0x322   : > { %s936_s17 = smov %s939_s20  ;;  %s937_s18 = smov %s943_s21 }
 0x323   :  { %13 = sbr.rel (!%p11_p7) target bundleno = 3 (0x3), region = 83 }

// kernel: reward_model_forward.13
= control target key start
LH: loop header
LB: loop body
LE: loop exit
PB: predicated region body
PF: predicated region fallthrough
CT: control target
= control target key end

     0   :  { %v202_v0 = vmov 0.0   ;;  %vm203_vm0 = vmmov 0   ;;  %vm47_vm1 = vcmask 261120   ;;  %vm160_vm2 = vcmask 257024   ;;  %s271_s1 = inlined_call_operand.vmem [shape: bf16[32,32], index: 1, kind: input, shape index: {}]   ;;  %s272_s0 = inlined_call_operand.vmem [shape: bf16[16,32], index: 0, kind: input, shape index: {}]   ;;  %s273_s3 = inlined_call_operand.vmem [shape: bf16[16,32], index: 3, kind: input, shape index: {}]   ;;  %s274_s2 = inlined_call_operand.vmem [shape: f32[1,32], index: 2, kind: input, shape index: {}]   ;;  %s275_s4 = inlined_call_operand.vmem [shape: f32[1,32], index: 4, kind: input, shape index: {}]   ;;  %s276_s5 = inlined_call_operand.vmem [shape: f32[1,32], index: 5, kind: input, shape index: {}]   ;;  %s277_s6 = inlined_call_operand.vmem [shape: bf16[16,32], index: 6, kind: output, shape index: {}]  }
   0x1   :  { %185 = vmatprep.subr.bf16.mxu0 %v202_v0  ;;  %v195_v1 = vld [vmem:[%s271_s1 + $0x8] sm:$0xff]   ;;  %189 = vmatprep.mubr.msk.bf16.mxu0 %vm203_vm0, %v202_v0  ;;  %v196_v2 = vld [vmem:[%s271_s1] sm:$0xff]  }
   0x2   :  { %186 = vmatpush3.bf16.msra.mxu0 %v195_v1  ;;  %v197_v3 = vld [vmem:[%s272_s0] sm:$0xff]  }
   0x3   :  { %187 = vmatprep.subr.bf16.mxu0 %v202_v0  ;;  %v179_v4 = vld [vmem:[%s273_s3] sm:$0xff]  }
   0x4   :  { %v180_v5 = vunpack.c.l.bf16 %v179_v4  ;;  %v171_v7 = vld [vmem:[%s274_s2] ss:$0 sm:$0xff]  ;;  %v181_v9 = vunpack.c.h.bf16 %v179_v4 }
   0x5   :  { %v172_v35 = vld [vmem:[%s275_s4] ss:$0 sm:$0xff] }
   0x6   :  { %188 = vmatpush3.bf16.msra.mxu0 %v196_v2  ;;  %v173_v37 = vld [vmem:[%s276_s5] ss:$0 sm:$0xff] }
   0x9   :  { %190 = vmatmul.mubr.msk.bf16.vlgmr.msra.gmra.mxu0 %vm47_vm1, %v197_v3 }
  0xc9   :  { %v85_v6 = vpop.f32.mrf.mxu0 }
  0xca   :  { %v96_v8 = vadd.f32 %v180_v5, %v85_v6 }
  0xcb   :  { %v191_v10 = vpop.f32.mrf.mxu0 }
  0xcc   :  { %v105_v11 = vadd.f32 %v171_v7, %v96_v8 }
  0xcd   :  { %v88_v12 = vpop.f32.mrf.mxu0 }
  0xce   :  { %v97_v13 = vadd.f32 %v181_v9, %v88_v12  ;;  %v107_v14 = vsel %vm47_vm1, %v105_v11, 0.0 }
  0xcf   :  { %108 = vadd.xlane.f32.xlu0 %v107_v14  ;;  %v192_v15 = vpop.f32.mrf.mxu0 }
  0xd0   :  { %v106_v16 = vadd.f32 %v171_v7, %v97_v13 }
  0xd2   :  { %v110_v17 = vsel %vm47_vm1, %v106_v16, 0.0 }
  0xd3   :  { %111 = vadd.xlane.f32.xlu0 %v110_v17 }
 0x158   :  { %v109_v18 = vpop.xlane.xlu0 %108 }
 0x159   :  { %v114_v19 = vmul.f32 0.03125, %v109_v18 }
 0x15b   :  { %v116_v20 = vsub.f32 %v105_v11, %v114_v19 }
 0x15c   :  { %v112_v21 = vpop.xlane.xlu0 %111 }
 0x15d   :  { %v115_v22 = vmul.f32 0.03125, %v112_v21  ;;  %v118_v23 = vmul.f32 %v116_v20, %v116_v20 }
 0x15f   :  { %v117_v24 = vsub.f32 %v106_v16, %v115_v22  ;;  %v120_v25 = vsel %vm47_vm1, %v118_v23, 0.0 }
 0x160   :  { %121 = vadd.xlane.f32.xlu1 %v120_v25 }
 0x161   :  { %v119_v26 = vmul.f32 %v117_v24, %v117_v24 }
 0x163   :  { %v123_v27 = vsel %vm47_vm1, %v119_v26, 0.0 }
 0x164   :  { %124 = vadd.xlane.f32.xlu1 %v123_v27 }
 0x1e9   :  { %v122_v28 = vpop.xlane.xlu1 %121 }
 0x1ea   :  { %v126_v29 = vmul.f32 0.03125, %v122_v28 }
 0x1ec   :  { %v128_v30 = vadd.f32 1e-12, %v126_v29 }
 0x1ed   :  { %v125_v31 = vpop.xlane.xlu1 %124 }
 0x1ee   :  { %198 = vrsqrt.f32 %v128_v30  ;;  %v127_v32 = vmul.f32 0.03125, %v125_v31 }
 0x1f0   :  { %v129_v33 = vadd.f32 1e-12, %v127_v32 }
 0x1f2   :  { %200 = vrsqrt.f32 %v129_v33 }
 0x1fb   :  { %v199_v34 = vpop.eup %198 }
 0x1fc   :  { %v132_v36 = vmul.f32 %v199_v34, %v116_v20 }
 0x1fe   :  { %v141_v38 = vmul.f32 %v172_v35, %v132_v36 }
 0x1ff   :  { %v201_v39 = vpop.eup %200 }
 0x200   :  { %v150_v40 = vadd.f32 %v173_v37, %v141_v38  ;;  %v133_v41 = vmul.f32 %v201_v39, %v117_v24 }
 0x202   :  { %v176_v42 = vpack.c.bf16 %v150_v40, %v150_v40  ;;  %v142_v43 = vmul.f32 %v172_v35, %v133_v41 }
 0x204   :  { %161 = vst.msk [vmem:[%s277_s6] sm:$0xf] %vm160_vm2, %v176_v42  ;;  %v151_v44 = vadd.f32 %v173_v37, %v142_v43 }
 0x206   :  { %v177_v45 = vpack.c.bf16 %v151_v44, %v151_v44 }
 0x208   :  { %162 = vst.msk [vmem:[%s277_s6 + $0x4] sm:$0xf] %vm160_vm2, %v177_v45 }

// kernel: reward_model_forward.14
= control target key start
LH: loop header
LB: loop body
LE: loop exit
PB: predicated region body
PF: predicated region fallthrough
CT: control target
= control target key end

     0   :  { %vm34_vm0 = vcmask 261120   ;;  %v360_v0 = vmov 0.0   ;;  %vm361_vm1 = vmmov 0   ;;  %vm165_vm2 = vcmask 523264   ;;  %s458_s1 = inlined_call_operand.vmem [shape: bf16[32,64], index: 1, kind: input, shape index: {}]   ;;  %s459_s0 = inlined_call_operand.vmem [shape: bf16[16,32], index: 0, kind: input, shape index: {}, may-alias: {0,5}]   ;;  %s460_s3 = inlined_call_operand.vmem [shape: bf16[64,32], index: 3, kind: input, shape index: {}]   ;;  %s461_s2 = inlined_call_operand.vmem [shape: f32[1,64], index: 2, kind: input, shape index: {}]   ;;  %s462_s5 = inlined_call_operand.vmem [shape: bf16[16,32], index: 5, kind: input, shape index: {}, may-alias: {0,5}]   ;;  %s463_s4 = inlined_call_operand.vmem [shape: f32[1,32], index: 4, kind: input, shape index: {}]   ;;  %s464_s6 = inlined_call_operand.vmem [shape: f32[1,32], index: 6, kind: input, shape index: {}]   ;;  %s465_s7 = inlined_call_operand.vmem [shape: f32[1,32], index: 7, kind: input, shape index: {}]   ;;  %s466_s8 = inlined_call_operand.vmem [shape: bf16[16,32], index: 8, kind: output, shape index: {}]  }
   0x1   :  { %323 = vmatprep.subr.bf16.mxu0 %v360_v0  ;;  %v345_v1 = vld [vmem:[%s458_s1 + $0x8] sm:$0xff]   ;;  %327 = vmatprep.mubr.msk.bf16.mxu0 %vm361_vm1, %v360_v0  ;;  %35 = vst.msk [vmem:[#allocation2] sm:$0xff] %vm34_vm0, %v360_v0  ;;  %36 = vst.msk [vmem:[#allocation2 + $0x8] sm:$0xff] %vm34_vm0, %v360_v0  ;;  %v346_v2 = vld [vmem:[%s458_s1] sm:$0xff]   ;;  %vm287_vm3 = vcmask 257024  }
   0x2   :  { %331 = vmatprep.subr.bf16.mxu1 %v360_v0  ;;  %339 = vmatprep.mubr.msk.bf16.mxu1 %vm361_vm1, %v360_v0  ;;  %v347_v3 = vld [vmem:[%s459_s0] sm:$0xff]   ;;  %v348_v4 = vld [vmem:[%s460_s3 + $0x18] sm:$0xff]   ;;  %v349_v5 = vld [vmem:[%s460_s3 + $0x10] sm:$0xff]  }
   0x3   :  { %324 = vmatpush3.bf16.msra.mxu0 %v345_v1  ;;  %332 = vmatpush3.bf16.msra.mxu1 %v348_v4  ;;  %v350_v6 = vld [vmem:[%s460_s3 + $0x8] sm:$0xff]   ;;  %v351_v7 = vld [vmem:[%s460_s3] sm:$0xff]  }
   0x4   :  { %325 = vmatprep.subr.bf16.mxu0 %v360_v0  ;;  %333 = vmatprep.subr.bf16.mxu1 %v360_v0  ;;  %v294_v8 = vld [vmem:[%s461_s2] ss:$0 sm:$0xff] }
   0x5   :  { %v312_v40 = vld [vmem:[%s462_s5] sm:$0xff]  }
   0x6   :  { %v313_v43 = vunpack.c.l.bf16 %v312_v40  ;;  %v304_v45 = vld [vmem:[%s463_s4] ss:$0 sm:$0xff]  ;;  %v314_v47 = vunpack.c.h.bf16 %v312_v40 }
   0x7   :  { %326 = vmatpush3.bf16.msra.mxu0 %v346_v2  ;;  %334 = vmatpush3.bf16.msra.mxu1 %v349_v5 }
   0x8   :  { %335 = vmatprep.subr.bf16.mxu1 %v360_v0  ;;  %v130_v34 = vld [vmem:[#allocation2] sm:$0xff]  ;;  %v131_v38 = vld [vmem:[#allocation2 + $0x8] sm:$0xff] }
   0xa   :  { %328 = vmatmul.mubr.msk.bf16.vlgmr.msra.gmra.mxu0 %vm34_vm0, %v347_v3 }
   0xb   :  { %336 = vmatpush3.bf16.msra.mxu1 %v350_v6 }
   0xc   :  { %337 = vmatprep.subr.bf16.mxu1 %v360_v0 }
   0xf   :  { %338 = vmatpush3.bf16.msra.mxu1 %v351_v7  ;;  %v305_v7 = vld [vmem:[%s464_s6] ss:$0 sm:$0xff] }
  0xca   :  { %v105_v9 = vpop.f32.mrf.mxu0 }
  0xcb   :  { %v106_v10 = vadd.f32 %v294_v8, %v105_v9  ;;  %v306_v9 = vld [vmem:[%s465_s7] ss:$0 sm:$0xff] }
  0xcc   :  { %v329_v11 = vpop.f32.mrf.mxu0 }
  0xcd   :  { %v114_v12 = vmul.f32 0.044715, %v106_v10  ;;  %v112_v28 = vmul.f32 0.5, %v106_v10 }
  0xce   :  { %v108_v13 = vpop.f32.mrf.mxu0 }
  0xcf   :  { %v116_v14 = vmul.f32 %v114_v12, %v106_v10  ;;  %v109_v15 = vadd.f32 %v294_v8, %v108_v13 }
  0xd0   :  { %v330_v16 = vpop.f32.mrf.mxu0 }
  0xd1   :  { %v118_v17 = vmul.f32 %v116_v14, %v106_v10  ;;  %v115_v18 = vmul.f32 0.044715, %v109_v15  ;;  %v113_v29 = vmul.f32 0.5, %v109_v15 }
  0xd3   :  { %v120_v19 = vadd.f32 %v118_v17, %v106_v10  ;;  %v117_v20 = vmul.f32 %v115_v18, %v109_v15 }
  0xd5   :  { %v122_v21 = vmul.f32 0.7978846, %v120_v19  ;;  %v119_v22 = vmul.f32 %v117_v20, %v109_v15 }
  0xd7   :  { %352 = vtanh.f32 %v122_v21  ;;  %v121_v23 = vadd.f32 %v119_v22, %v109_v15 }
  0xd9   :  { %v123_v24 = vmul.f32 0.7978846, %v121_v23 }
  0xdb   :  { %354 = vtanh.f32 %v123_v24 }
  0xe4   :  { %v353_v25 = vpop.eup %352 }
  0xe5   :  { %v126_v26 = vadd.f32 1.0, %v353_v25 }
  0xe7   :  { %v128_v31 = vmul.f32 %v126_v26, %v112_v28 }
  0xe8   :  { %v355_v27 = vpop.eup %354 }
  0xe9   :  { %v127_v30 = vadd.f32 1.0, %v355_v27 }
  0xeb   :  { %v129_v32 = vmul.f32 %v127_v30, %v113_v29 }
  0xed   :  { %v132_v33 = vpack.c.bf16 %v129_v32, %v128_v31 }
  0xef   :  { %340 = vmatmul.mubr.msk.bf16.vlgmr.msra.gmra.mxu1 %vm165_vm2, %v132_v33 }
 0x1af   :  { %v203_v35 = vpop.f32.mrf.mxu1 }
 0x1b0   :  { %v210_v36 = vadd.f32 %v203_v35, %v130_v34 }
 0x1b1   :  { %v341_v37 = vpop.f32.mrf.mxu1 }
 0x1b2   :  { %212 = vst.msk [vmem:[#allocation2] sm:$0xff] %vm34_vm0, %v210_v36 }
 0x1b3   :  { %v206_v39 = vpop.f32.mrf.mxu1 }
 0x1b4   :  { %v211_v41 = vadd.f32 %v206_v39, %v131_v38 }
 0x1b5   :  { %v342_v42 = vpop.f32.mrf.mxu1 }
 0x1b6   :  { %213 = vst.msk [vmem:[#allocation2 + $0x8] sm:$0xff] %vm34_vm0, %v211_v41 }
 0x1b9   :  { %v221_v44 = vld [vmem:[#allocation2] sm:$0xff] }
 0x1ba   :  { %v223_v46 = vadd.f32 %v313_v43, %v221_v44 }
 0x1bc   :  { %v232_v48 = vadd.f32 %v304_v45, %v223_v46 }
 0x1bd   :  { %v222_v49 = vld [vmem:[#allocation2 + $0x8] sm:$0xff] }
 0x1be   :  { %v234_v50 = vsel %vm34_vm0, %v232_v48, 0.0  ;;  %v224_v51 = vadd.f32 %v314_v47, %v222_v49 }
 0x1bf   :  { %235 = vadd.xlane.f32.xlu0 %v234_v50 }
 0x1c0   :  { %v233_v52 = vadd.f32 %v304_v45, %v224_v51 }
 0x1c2   :  { %v237_v53 = vsel %vm34_vm0, %v233_v52, 0.0 }
 0x1c3   :  { %238 = vadd.xlane.f32.xlu0 %v237_v53 }
 0x248   :  { %v236_v54 = vpop.xlane.xlu0 %235 }
 0x249   :  { %v241_v55 = vmul.f32 0.03125, %v236_v54 }
 0x24b   :  { %v243_v56 = vsub.f32 %v232_v48, %v241_v55 }
 0x24c   :  { %v239_v57 = vpop.xlane.xlu0 %238 }
 0x24d   :  { %v242_v58 = vmul.f32 0.03125, %v239_v57  ;;  %v245_v59 = vmul.f32 %v243_v56, %v243_v56 }
 0x24f   :  { %v244_v60 = vsub.f32 %v233_v52, %v242_v58  ;;  %v247_v61 = vsel %vm34_vm0, %v245_v59, 0.0 }
 0x250   :  { %248 = vadd.xlane.f32.xlu1 %v247_v61 }
 0x251   :  { %v246_v62 = vmul.f32 %v244_v60, %v244_v60 }
 0x253   :  { %v250_v63 = vsel %vm34_vm0, %v246_v62, 0.0 }
 0x254   :  { %251 = vadd.xlane.f32.xlu1 %v250_v63 }
 0x2d9   :  { %v249_v0 = vpop.xlane.xlu1 %248 }
 0x2da   :  { %v253_v1 = vmul.f32 0.03125, %v249_v0 }
 0x2dc   :  { %v255_v2 = vadd.f32 1e-12, %v253_v1 }
 0x2dd   :  { %v252_v3 = vpop.xlane.xlu1 %251 }
 0x2de   :  { %356 = vrsqrt.f32 %v255_v2  ;;  %v254_v4 = vmul.f32 0.03125, %v252_v3 }
 0x2e0   :  { %v256_v5 = vadd.f32 1e-12, %v254_v4 }
 0x2e2   :  { %358 = vrsqrt.f32 %v256_v5 }
 0x2eb   :  { %v357_v6 = vpop.eup %356 }
 0x2ec   :  { %v259_v8 = vmul.f32 %v357_v6, %v243_v56 }
 0x2ee   :  { %v268_v10 = vmul.f32 %v305_v7, %v259_v8 }
 0x2ef   :  { %v359_v11 = vpop.eup %358 }
 0x2f0   :  { %v277_v12 = vadd.f32 %v306_v9, %v268_v10  ;;  %v260_v13 = vmul.f32 %v359_v11, %v244_v60 }
 0x2f2   :  { %v309_v14 = vpack.c.bf16 %v277_v12, %v277_v12  ;;  %v269_v15 = vmul.f32 %v305_v7, %v260_v13 }
 0x2f4   :  { %288 = vst.msk [vmem:[%s466_s8] sm:$0xf] %vm287_vm3, %v309_v14  ;;  %v278_v16 = vadd.f32 %v306_v9, %v269_v15 }
 0x2f6   :  { %v310_v17 = vpack.c.bf16 %v278_v16, %v278_v16 }
 0x2f8   :  { %289 = vst.msk [vmem:[%s466_s8 + $0x4] sm:$0xf] %vm287_vm3, %v310_v17 }

// kernel: reward_model_forward.19
= control target key start
LH: loop header
LB: loop body
LE: loop exit
PB: predicated region body
PF: predicated region fallthrough
CT: control target
= control target key end

     0   :  { %v234_v1 = vmov 0.0   ;;  %vm235_vm0 = vmmov 0   ;;  %s293_s0 = inlined_call_operand.vmem [shape: bf16[2,32], index: 0, kind: input, shape index: {}]   ;;  %s294_s1 = inlined_call_operand.vmem [shape: bf16[32,32], index: 1, kind: input, shape index: {}]   ;;  %s295_s2 = inlined_call_operand.vmem [shape: f32[1,32], index: 2, kind: input, shape index: {}]   ;;  %s296_s3 = inlined_call_operand.vmem [shape: bf16[32,128], index: 3, kind: input, shape index: {}]   ;;  %s297_s4 = inlined_call_operand.vmem [shape: f32[1,128], index: 4, kind: input, shape index: {}]   ;;  %s298_s5 = inlined_call_operand.hbm [shape: f32[2,128], index: 5, kind: output, shape index: {}]  }
   0x1   :  { %v206_v0 = vld [vmem:[%s294_s1 + $0x8] sm:$0xff]   ;;  %187 = vmatprep.subr.bf16.mxu0 %v234_v1  ;;  %195 = vmatprep.subr.bf16.mxu1 %v234_v1  ;;  %v207_v2 = vld [vmem:[%s294_s1] sm:$0xff]  }
   0x2   :  { %188 = vmatpush3.bf16.msra.mxu0 %v206_v0  ;;  %191 = vmatprep.mubr.msk.bf16.mxu0 %vm235_vm0, %v234_v1 }
   0x3   :  { %189 = vmatprep.subr.bf16.mxu0 %v234_v1  ;;  %199 = vmatprep.mubr.msk.bf16.mxu1 %vm235_vm0, %v234_v1 }
   0x4   :  { %10 = vsyncpa [#allocation3], 0  ;;  %v22_v3 = vld [vmem:[%s293_s0] sm:$0x1]  ;;  %vm46_vm1 = vcmask 261120   ;;  %v208_v4 = vld [vmem:[%s296_s3 + $0x8] sm:$0xff]  }
   0x5   :  { %196 = vmatpush3.bf16.msra.mxu1 %v208_v4  ;;  %v209_v5 = vld [vmem:[%s296_s3] sm:$0xff]   ;;  %s236_s3 = smov [#allocation2]  }
   0x6   :  { %190 = vmatpush3.bf16.msra.mxu0 %v207_v2  ;;  %197 = vmatprep.subr.bf16.mxu1 %v234_v1  ;;  %v173_v6 = vld [vmem:[%s295_s2] ss:$0 sm:$0xff]  ;;  %s165_s30 = sshll.u32 %s236_s3, 4  ;;  %s166_s30 = int_to_ptr.vmem [resolvable:$true] %s165_s30 }
   0x7   :  { %v177_v14 = vld [vmem:[%s297_s4] ss:$0 sm:$0xff]  ;;  %s212_s2 = scalar_lea.vmem %s166_s30, 32  ;;  %p217_p1 = scmp.lt.s32.totalorder %s166_s30, %s166_s30 }
   0x8   :  { %p213_p0 = scmp.ne.s32.totalorder %s166_s30, %s212_s2  ;;  %p218_p2 = scmp.lt.s32.totalorder %s212_s2, %s212_s2 }
   0x9   :  { %192 = vmatmul.mubr.msk.bf16.vlgmr.msra.gmra.mxu0 %vm46_vm1, %v22_v3  ;;  %198 = vmatpush3.bf16.msra.mxu1 %v209_v5 }
   0xa   :  { %p219_p3 = por %p218_p2, %p217_p1 }
   0xc   :  { %p220_p4 = pnand %p219_p3, %p213_p0 }
  0xc9   :  { %v84_v7 = vpop.f32.mrf.mxu0 }
  0xca   :  { %v85_v8 = vadd.f32 %v173_v6, %v84_v7 }
  0xcb   :  { %v193_v9 = vpop.f32.mrf.mxu0 }
  0xcc   :  { %210 = vtanh.f32 %v85_v8 }
  0xcd   :  { %v87_v10 = vpop.f32.mrf.mxu0 }
  0xcf   :  { %v194_v11 = vpop.f32.mrf.mxu0 }
  0xd9   :  { %v211_v12 = vpop.eup %210 }
  0xda   :  { %v91_v13 = vpack.c.bf16 %v211_v12, %v211_v12 }
  0xdc   :  { %200 = vmatmul.mubr.msk.bf16.vlgmr.msra.gmra.mxu1 %vm46_vm1, %v91_v13 }
 0x19c   :  { %v152_v15 = vpop.f32.mrf.mxu1 }
 0x19d   :  { %v153_v16 = vadd.f32 %v177_v14, %v152_v15 }
 0x19e   :  { %v201_v17 = vpop.f32.mrf.mxu1 }
 0x19f   :  { %158 = vst [vmem:[#allocation2] sm:$0x3] %v153_v16 }
 0x1a0   :  { %v155_v18 = vpop.f32.mrf.mxu1 }
 0x1a1   :  { %223 = shalt.err (!%p220_p4)
}
 0x1a2   :  { %168 = dma.vmem_to_hbm [thread:$0]  %s166_s30, 32, %s298_s5, [#allocation3]   ;;  %v202_v19 = vpop.f32.mrf.mxu1 }
 0x1a3   :  { %232 = dma.done.wait [#allocation3], 32  }
 0x1a4   :  { %233 = vsyncadd [#allocation3], 4294967264 }
 0x1a5   :  { %172 = vsyncpa [#allocation3], 1 }

</bundles_post_ra>
